<compile_context>
chip_gen: v7x
topology: tpu7x:2x2x1
jax: 0.10.0
libtpu: 0.0.40
codegen_flags: <defaults>
</compile_context>

<pallas_src>
import math

import jax
import jax.numpy as jnp
from jax.experimental import pallas as pl
from jax.experimental.pallas import tpu as pltpu


def _layernorm(v, g, b, eps=1e-5):
    mu = jnp.mean(v, axis=-1, keepdims=True)
    var = jnp.mean(jnp.square(v - mu), axis=-1, keepdims=True)
    return (v - mu) * jax.lax.rsqrt(var + eps) * g + b


def transformer_kernel(tok_ref, emb_ref, pe_ref,
                       wqkv_ref, bqkv_ref, wo_ref, bo_ref,
                       ln1g_ref, ln1b_ref,
                       w1_ref, b1_ref, w2_ref, b2_ref,
                       ln2g_ref, ln2b_ref,
                       fcw_ref, fcb_ref,
                       out_ref, x_scr):
    # grid = (batch, layer); layer axis is "arbitrary" (weights streamed per
    # layer, activations carried in x_scr), batch axis is "parallel".
    l = pl.program_id(1)
    n_layers = pl.num_programs(1)

    H, hd, E = wo_ref.shape                 # (H, hd, E)
    S = x_scr.shape[0]
    V = emb_ref.shape[0]
    scale = 1.0 / math.sqrt(hd)
    wdt = wqkv_ref.dtype                    # bf16 weight storage

    # ---- layer 0 only: embedding lookup (one-hot MXU matmul) + positional enc
    @pl.when(l == 0)
    def _():
        tok = tok_ref[...]                                          # (S, 1) i32
        vocab = jax.lax.broadcasted_iota(jnp.int32, (S, V), 1)
        onehot = (vocab == tok).astype(wdt)                         # (S, V)
        x0 = jnp.dot(onehot, emb_ref[...],
                     preferred_element_type=jnp.float32)            # (S, E) f32
        x_scr[...] = x0 + pe_ref[...]

    x = x_scr[...]                                                  # (S, E) f32
    x_b = x.astype(wdt)

    # ---- self-attention: batched-over-heads einsums, no lane-offset slicing,
    #      no per-head loop, no concatenate ----
    wqkv = wqkv_ref[...]                                            # (3H, E, hd)
    bqkv = bqkv_ref[...]                                            # (3H, 1, hd)
    wq, wk, wv = wqkv[:H], wqkv[H:2 * H], wqkv[2 * H:]              # major-dim slices
    bq, bk, bv = bqkv[:H], bqkv[H:2 * H], bqkv[2 * H:]

    xh = jnp.broadcast_to(x_b[None], (H, S, E))                     # (H, S, E)
    q = jnp.einsum('hse,heo->hso', xh, wq,
                   preferred_element_type=jnp.float32) + bq         # (H, S, hd)
    k = jnp.einsum('hse,heo->hso', xh, wk,
                   preferred_element_type=jnp.float32) + bk
    v = jnp.einsum('hse,heo->hso', xh, wv,
                   preferred_element_type=jnp.float32) + bv

    s = jnp.einsum('hqd,hkd->hqk', q, k,
                   preferred_element_type=jnp.float32) * scale      # (H, S, S)
    s = s - jnp.max(s, axis=-1, keepdims=True)
    p = jnp.exp(s)
    p = p * pl.reciprocal(jnp.sum(p, axis=-1, keepdims=True), approx=True)
    ctx = jnp.einsum('hqk,hkd->hqd', p, v,
                     preferred_element_type=jnp.float32)            # (H, S, hd)

    z = jnp.einsum('hqd,hde->hqe', ctx.astype(wdt), wo_ref[...],
                   preferred_element_type=jnp.float32)              # (H, S, E)
    attn = jnp.sum(z, axis=0) + bo_ref[...]                         # (S, E)
    x = _layernorm(x + attn, ln1g_ref[...], ln1b_ref[...])

    # ---- feed-forward (hidden F = 128 -> lane-dense MXU output) ----
    hdn = jnp.maximum(
        jnp.dot(x.astype(wdt), w1_ref[...],
                preferred_element_type=jnp.float32) + b1_ref[...], 0.0)
    ff = jnp.dot(hdn.astype(wdt), w2_ref[...],
                 preferred_element_type=jnp.float32) + b2_ref[...]
    x = _layernorm(x + ff, ln2g_ref[...], ln2b_ref[...])

    x_scr[...] = x

    # ---- last layer only: vocab projection (V = 128 -> unmasked store) ----
    @pl.when(l == n_layers - 1)
    def _():
        out_ref[...] = (jnp.dot(x.astype(wdt), fcw_ref[...],
                                preferred_element_type=jnp.float32)
                        + fcb_ref[...]).astype(out_ref.dtype)


def transformer_forward(tokens_sb, params):
    """tokens_sb: (S, B) int32 (seq-first like nn.Transformer) -> (S, B, V) f32."""
    S, B = tokens_sb.shape
    V, E = params['emb'].shape
    L = params['wqkv'].shape[0]
    H, hd = params['wo'].shape[1], params['wo'].shape[2]
    F = params['w1'].shape[2]
    N = B * S

    tok = tokens_sb.T.reshape(N, 1).astype(jnp.int32)               # batch-major

    logits = pl.pallas_call(
        transformer_kernel,
        out_shape=jax.ShapeDtypeStruct((N, V), jnp.float32),
        grid=(B, L),
        in_specs=[
            pl.BlockSpec((S, 1), lambda b, l: (b, 0)),                       # tok
            pl.BlockSpec((V, E), lambda b, l: (0, 0)),                       # emb
            pl.BlockSpec((S, E), lambda b, l: (0, 0)),                       # pe
            pl.BlockSpec((None, 3 * H, E, hd), lambda b, l: (l, 0, 0, 0)),   # wqkv
            pl.BlockSpec((None, 3 * H, 1, hd), lambda b, l: (l, 0, 0, 0)),   # bqkv
            pl.BlockSpec((None, H, hd, E), lambda b, l: (l, 0, 0, 0)),       # wo
            pl.BlockSpec((None, 1, E), lambda b, l: (l, 0, 0)),              # bo
            pl.BlockSpec((None, 1, E), lambda b, l: (l, 0, 0)),              # ln1g
            pl.BlockSpec((None, 1, E), lambda b, l: (l, 0, 0)),              # ln1b
            pl.BlockSpec((None, E, F), lambda b, l: (l, 0, 0)),              # w1
            pl.BlockSpec((None, 1, F), lambda b, l: (l, 0, 0)),              # b1
            pl.BlockSpec((None, F, E), lambda b, l: (l, 0, 0)),              # w2
            pl.BlockSpec((None, 1, E), lambda b, l: (l, 0, 0)),              # b2
            pl.BlockSpec((None, 1, E), lambda b, l: (l, 0, 0)),              # ln2g
            pl.BlockSpec((None, 1, E), lambda b, l: (l, 0, 0)),              # ln2b
            pl.BlockSpec((E, V), lambda b, l: (0, 0)),                       # fcw
            pl.BlockSpec((1, V), lambda b, l: (0, 0)),                       # fcb
        ],
        out_specs=pl.BlockSpec((S, V), lambda b, l: (b, 0)),
        scratch_shapes=[pltpu.VMEM((S, E), jnp.float32)],
        compiler_params=pltpu.CompilerParams(
            dimension_semantics=("parallel", "arbitrary"),
            vmem_limit_bytes=32 * 1024 * 1024),
    )(tok, params['emb'], params['pe'],
      params['wqkv'], params['bqkv'], params['wo'], params['bo'],
      params['ln1g'], params['ln1b'],
      params['w1'], params['b1'], params['w2'], params['b2'],
      params['ln2g'], params['ln2b'],
      params['fcw'], params['fcb'])
    return logits.reshape(B, S, V).transpose(1, 0, 2)               # (S, B, V)


def ref_forward(tokens_sb, params):
    """Pure-JAX reference mirroring the kernel's precision policy."""
    S, B = tokens_sb.shape
    V, E = params['emb'].shape
    L = params['wqkv'].shape[0]
    H, hd = params['wo'].shape[1], params['wo'].shape[2]
    scale = 1.0 / math.sqrt(hd)
    f32, bdt = jnp.float32, params['wqkv'].dtype

    x = params['emb'][tokens_sb.T].astype(f32) + params['pe'][None]  # (B, S, E)
    for l in range(L):
        xb = x.astype(bdt)
        wqkv_l, bqkv_l = params['wqkv'][l], params['bqkv'][l]
        q = jnp.einsum('bse,heo->bhso', xb, wqkv_l[:H],
                       preferred_element_type=f32) + bqkv_l[:H]
        k = jnp.einsum('bse,heo->bhso', xb, wqkv_l[H:2 * H],
                       preferred_element_type=f32) + bqkv_l[H:2 * H]
        v = jnp.einsum('bse,heo->bhso', xb, wqkv_l[2 * H:],
                       preferred_element_type=f32) + bqkv_l[2 * H:]
        s = jnp.einsum('bhqd,bhkd->bhqk', q, k,
                       preferred_element_type=f32) * scale
        p = jax.nn.softmax(s, axis=-1)
        ctx = jnp.einsum('bhqk,bhkd->bhqd', p, v, preferred_element_type=f32)
        attn = jnp.einsum('bhqd,hde->bqe', ctx.astype(bdt), params['wo'][l],
                          preferred_element_type=f32) + params['bo'][l]
        x = _layernorm(x + attn, params['ln1g'][l], params['ln1b'][l])
        hdn = jnp.maximum(
            jnp.einsum('bse,ef->bsf', x.astype(bdt), params['w1'][l],
                       preferred_element_type=f32) + params['b1'][l], 0.0)
        ff = jnp.einsum('bsf,fe->bse', hdn.astype(bdt), params['w2'][l],
                        preferred_element_type=f32) + params['b2'][l]
        x = _layernorm(x + ff, params['ln2g'][l], params['ln2b'][l])
    logits = jnp.einsum('bse,ev->bsv', x.astype(bdt), params['fcw'],
                        preferred_element_type=f32) + params['fcb']
    return logits.transpose(1, 0, 2)                                # (S, B, V)


if __name__ == "__main__":
    vocab_size, embedding_dim, num_heads, num_layers = 128, 32, 4, 2
    dim_ff = 128
    S, B = 8, 2
    V, E, L, H, F = vocab_size, embedding_dim, num_layers, num_heads, dim_ff
    hd = E // H

    key = jax.random.PRNGKey(0)
    keys = jax.random.split(key, 16)

    def u(k, shape, scale=0.1):
        return jax.random.uniform(k, shape, jnp.float32, -scale, scale)

    # Sinusoidal positional encoding (S, E).
    pos = jnp.arange(S, dtype=jnp.float32)[:, None]
    idx = jnp.arange(E // 2, dtype=jnp.float32)[None, :]
    angle = pos / jnp.power(10000.0, 2.0 * idx / E)
    pe = jnp.zeros((S, E), jnp.float32)
    pe = pe.at[:, 0::2].set(jnp.sin(angle)).at[:, 1::2].set(jnp.cos(angle))

    bf16 = jnp.bfloat16
    params = dict(
        emb=(jax.random.normal(keys[0], (V, E), jnp.float32) * 0.5).astype(bf16),
        pe=pe,
        wqkv=u(keys[1], (L, 3 * H, E, hd)).astype(bf16),   # per-head-major QKV
        bqkv=u(keys[2], (L, 3 * H, 1, hd)),
        wo=u(keys[3], (L, H, hd, E)).astype(bf16),         # per-head-major out proj
        bo=u(keys[4], (L, 1, E)),
        ln1g=1.0 + u(keys[5], (L, 1, E)),
        ln1b=u(keys[6], (L, 1, E)),
        w1=u(keys[7], (L, E, F)).astype(bf16),
        b1=u(keys[8], (L, 1, F)),
        w2=u(keys[9], (L, F, E)).astype(bf16),
        b2=u(keys[10], (L, 1, E)),
        ln2g=1.0 + u(keys[11], (L, 1, E)),
        ln2b=u(keys[12], (L, 1, E)),
        fcw=u(keys[13], (E, V)).astype(bf16),
        fcb=u(keys[14], (1, V)),
    )

    tokens = jax.random.randint(keys[15], (S, B), 0, V, dtype=jnp.int32)

    out = jax.block_until_ready(transformer_forward(tokens, params))
    ref = ref_forward(tokens, params)

    assert out.shape == (S, B, V)
    max_err = jnp.max(jnp.abs(out - ref))
    assert jnp.allclose(out, ref, rtol=1e-2, atol=1e-2), (
        f"mismatch vs reference, max abs err = {max_err}")
    print("KERNEL_OK")
</pallas_src>

<mosaic_0001>
module attributes {stable_mosaic.version = 11 : i64} {
  func.func @transformer_kernel(%arg0: i32, %arg1: i32, %arg2: memref<8x1xi32, #tpu.memory_space<vmem>>, %arg3: memref<128x32xbf16, #tpu.memory_space<vmem>>, %arg4: memref<8x32xf32, #tpu.memory_space<vmem>>, %arg5: memref<1x12x32x8xbf16, #tpu.memory_space<vmem>>, %arg6: memref<1x12x1x8xf32, #tpu.memory_space<vmem>>, %arg7: memref<1x4x8x32xbf16, #tpu.memory_space<vmem>>, %arg8: memref<1x1x32xf32, #tpu.memory_space<vmem>>, %arg9: memref<1x1x32xf32, #tpu.memory_space<vmem>>, %arg10: memref<1x1x32xf32, #tpu.memory_space<vmem>>, %arg11: memref<1x32x128xbf16, #tpu.memory_space<vmem>>, %arg12: memref<1x1x128xf32, #tpu.memory_space<vmem>>, %arg13: memref<1x128x32xbf16, #tpu.memory_space<vmem>>, %arg14: memref<1x1x32xf32, #tpu.memory_space<vmem>>, %arg15: memref<1x1x32xf32, #tpu.memory_space<vmem>>, %arg16: memref<1x1x32xf32, #tpu.memory_space<vmem>>, %arg17: memref<32x128xbf16, #tpu.memory_space<vmem>>, %arg18: memref<1x128xf32, #tpu.memory_space<vmem>>, %arg19: memref<8x128xf32, #tpu.memory_space<vmem>>, %arg20: memref<8x32xf32, #tpu.memory_space<vmem>>) attributes {dimension_semantics = [#tpu.dimension_semantics<parallel>, #tpu.dimension_semantics<arbitrary>], iteration_bounds = array<i64: 2, 2>, scalar_prefetch = 0 : i64, scratch_operands = 1 : i64, tpu.core_type = #tpu.core_type<tc>, window_params = [{transform_indices = @transform_0, window_bounds = array<i64: 8, 1>}, {pipeline_mode = #tpu.pipeline_mode<synchronous>, transform_indices = @transform_1, window_bounds = array<i64: 128, 32>}, {pipeline_mode = #tpu.pipeline_mode<synchronous>, transform_indices = @transform_2, window_bounds = array<i64: 8, 32>}, {transform_indices = @transform_3, window_bounds = array<i64: 1, 12, 32, 8>}, {transform_indices = @transform_4, window_bounds = array<i64: 1, 12, 1, 8>}, {transform_indices = @transform_5, window_bounds = array<i64: 1, 4, 8, 32>}, {transform_indices = @transform_6, window_bounds = array<i64: 1, 1, 32>}, {transform_indices = @transform_7, window_bounds = array<i64: 1, 1, 32>}, {transform_indices = @transform_8, window_bounds = array<i64: 1, 1, 32>}, {transform_indices = @transform_9, window_bounds = array<i64: 1, 32, 128>}, {transform_indices = @transform_10, window_bounds = array<i64: 1, 1, 128>}, {transform_indices = @transform_11, window_bounds = array<i64: 1, 128, 32>}, {transform_indices = @transform_12, window_bounds = array<i64: 1, 1, 32>}, {transform_indices = @transform_13, window_bounds = array<i64: 1, 1, 32>}, {transform_indices = @transform_14, window_bounds = array<i64: 1, 1, 32>}, {pipeline_mode = #tpu.pipeline_mode<synchronous>, transform_indices = @transform_15, window_bounds = array<i64: 32, 128>}, {pipeline_mode = #tpu.pipeline_mode<synchronous>, transform_indices = @transform_16, window_bounds = array<i64: 1, 128>}, {transform_indices = @transform_17, window_bounds = array<i64: 8, 128>}]} {
    %c0_i32 = arith.constant 0 : i32
    %0 = arith.cmpi eq, %arg1, %c0_i32 : i32
    %1 = arith.extui %0 : i1 to i32
    %c0_i32_0 = arith.constant 0 : i32
    %2 = arith.cmpi ne, %1, %c0_i32_0 : i32
    scf.if %2 {
      %c0_66 = arith.constant 0 : index
      %c0_67 = arith.constant 0 : index
      %126 = vector.load %arg2[%c0_66, %c0_67] : memref<8x1xi32, #tpu.memory_space<vmem>>, vector<8x1xi32>
      %127 = tpu.iota {dimensions = array<i32: 1>} : vector<8x128xi32>
      %128 = vector.broadcast %126 : vector<8x1xi32> to vector<8x128xi32>
      %129 = arith.cmpi eq, %127, %128 : vector<8x128xi32>
      %130 = arith.extui %129 : vector<8x128xi1> to vector<8x128xi32>
      %131 = arith.sitofp %130 : vector<8x128xi32> to vector<8x128xf32>
      %132 = arith.truncf %131 : vector<8x128xf32> to vector<8x128xbf16>
      %c0_68 = arith.constant 0 : index
      %c0_69 = arith.constant 0 : index
      %133 = vector.load %arg3[%c0_68, %c0_69] : memref<128x32xbf16, #tpu.memory_space<vmem>>, vector<128x32xbf16>
      %cst_70 = arith.constant dense<0.000000e+00> : vector<8x32xf32>
      %134 = tpu.matmul %132, %133, %cst_70 {dimension_numbers = #tpu.dot_dimension_numbers<[1], [0], [0], [1], [0, 0, 1, 1], [], []>} : vector<8x128xbf16>, vector<128x32xbf16>, vector<8x32xf32> -> vector<8x32xf32>
      %c0_71 = arith.constant 0 : index
      %c0_72 = arith.constant 0 : index
      %135 = vector.load %arg4[%c0_71, %c0_72] : memref<8x32xf32, #tpu.memory_space<vmem>>, vector<8x32xf32>
      %136 = arith.addf %134, %135 : vector<8x32xf32>
      %c0_73 = arith.constant 0 : index
      %c0_74 = arith.constant 0 : index
      %137 = vector.load %arg20[%c0_73, %c0_74] : memref<8x32xf32, #tpu.memory_space<vmem>>, vector<8x32xf32>
      tpu.vector_store %arg20[%c0_73, %c0_74], %136 {strides = array<i32>} : memref<8x32xf32, #tpu.memory_space<vmem>>, vector<8x32xf32>,
    } else {
    }
    %c0 = arith.constant 0 : index
    %c0_1 = arith.constant 0 : index
    %3 = vector.load %arg20[%c0, %c0_1] : memref<8x32xf32, #tpu.memory_space<vmem>>, vector<8x32xf32>
    %4 = arith.truncf %3 : vector<8x32xf32> to vector<8x32xbf16>
    %c0_2 = arith.constant 0 : index
    %c0_3 = arith.constant 0 : index
    %c0_4 = arith.constant 0 : index
    %c0_5 = arith.constant 0 : index
    %5 = vector.load %arg5[%c0_2, %c0_3, %c0_4, %c0_5] : memref<1x12x32x8xbf16, #tpu.memory_space<vmem>>, vector<1x12x32x8xbf16>
    %6 = vector.shape_cast %5 : vector<1x12x32x8xbf16> to vector<12x32x8xbf16>
    %c0_6 = arith.constant 0 : index
    %c0_7 = arith.constant 0 : index
    %c0_8 = arith.constant 0 : index
    %c0_9 = arith.constant 0 : index
    %7 = vector.load %arg6[%c0_6, %c0_7, %c0_8, %c0_9] : memref<1x12x1x8xf32, #tpu.memory_space<vmem>>, vector<1x12x1x8xf32>
    %8 = vector.shape_cast %7 : vector<1x12x1x8xf32> to vector<12x1x8xf32>
    %9 = vector.extract_strided_slice %6 {offsets = [0, 0, 0], sizes = [4, 32, 8], strides = [1, 1, 1]} : vector<12x32x8xbf16> to vector<4x32x8xbf16>
    %10 = vector.extract_strided_slice %6 {offsets = [4, 0, 0], sizes = [4, 32, 8], strides = [1, 1, 1]} : vector<12x32x8xbf16> to vector<4x32x8xbf16>
    %11 = vector.extract_strided_slice %6 {offsets = [8, 0, 0], sizes = [4, 32, 8], strides = [1, 1, 1]} : vector<12x32x8xbf16> to vector<4x32x8xbf16>
    %12 = vector.extract_strided_slice %8 {offsets = [0, 0, 0], sizes = [4, 1, 8], strides = [1, 1, 1]} : vector<12x1x8xf32> to vector<4x1x8xf32>
    %13 = vector.extract_strided_slice %8 {offsets = [4, 0, 0], sizes = [4, 1, 8], strides = [1, 1, 1]} : vector<12x1x8xf32> to vector<4x1x8xf32>
    %14 = vector.extract_strided_slice %8 {offsets = [8, 0, 0], sizes = [4, 1, 8], strides = [1, 1, 1]} : vector<12x1x8xf32> to vector<4x1x8xf32>
    %15 = vector.shape_cast %4 : vector<8x32xbf16> to vector<1x8x32xbf16>
    %16 = vector.shape_cast %15 : vector<1x8x32xbf16> to vector<1x8x32xbf16>
    %17 = vector.broadcast %16 : vector<1x8x32xbf16> to vector<4x8x32xbf16>
    "tpu.trace_start"() <{level = 10 : i32, message = "hse,heo->hso"}> : () -> ()
    %cst = arith.constant dense<0.000000e+00> : vector<4x8x8xf32>
    %18 = tpu.matmul %17, %9, %cst {dimension_numbers = #tpu.dot_dimension_numbers<[2], [1], [1], [2], [0, 0, 0, 1, 1, 2], [0], [0]>} : vector<4x8x32xbf16>, vector<4x32x8xbf16>, vector<4x8x8xf32> -> vector<4x8x8xf32>
    "tpu.trace_stop"() : () -> ()
    %19 = vector.broadcast %12 : vector<4x1x8xf32> to vector<4x8x8xf32>
    %20 = arith.addf %18, %19 : vector<4x8x8xf32>
    "tpu.trace_start"() <{level = 10 : i32, message = "hse,heo->hso"}> : () -> ()
    %cst_10 = arith.constant dense<0.000000e+00> : vector<4x8x8xf32>
    %21 = tpu.matmul %17, %10, %cst_10 {dimension_numbers = #tpu.dot_dimension_numbers<[2], [1], [1], [2], [0, 0, 0, 1, 1, 2], [0], [0]>} : vector<4x8x32xbf16>, vector<4x32x8xbf16>, vector<4x8x8xf32> -> vector<4x8x8xf32>
    "tpu.trace_stop"() : () -> ()
    %22 = vector.broadcast %13 : vector<4x1x8xf32> to vector<4x8x8xf32>
    %23 = arith.addf %21, %22 : vector<4x8x8xf32>
    "tpu.trace_start"() <{level = 10 : i32, message = "hse,heo->hso"}> : () -> ()
    %cst_11 = arith.constant dense<0.000000e+00> : vector<4x8x8xf32>
    %24 = tpu.matmul %17, %11, %cst_11 {dimension_numbers = #tpu.dot_dimension_numbers<[2], [1], [1], [2], [0, 0, 0, 1, 1, 2], [0], [0]>} : vector<4x8x32xbf16>, vector<4x32x8xbf16>, vector<4x8x8xf32> -> vector<4x8x8xf32>
    "tpu.trace_stop"() : () -> ()
    %25 = vector.broadcast %14 : vector<4x1x8xf32> to vector<4x8x8xf32>
    %26 = arith.addf %24, %25 : vector<4x8x8xf32>
    "tpu.trace_start"() <{level = 10 : i32, message = "hqd,hkd->hqk"}> : () -> ()
    %cst_12 = arith.constant dense<0.000000e+00> : vector<4x8x8xf32>
    %27 = tpu.matmul %20, %23, %cst_12 {dimension_numbers = #tpu.dot_dimension_numbers<[2], [2], [1], [1], [0, 0, 0, 1, 1, 1], [0], [0]>} : vector<4x8x8xf32>, vector<4x8x8xf32>, vector<4x8x8xf32> -> vector<4x8x8xf32>
    "tpu.trace_stop"() : () -> ()
    %cst_13 = arith.constant 0.353553385 : f32
    %28 = vector.broadcast %cst_13 : f32 to vector<4x8x8xf32>
    %29 = arith.mulf %27, %28 : vector<4x8x8xf32>
    %cst_14 = arith.constant dense<0xFF800000> : vector<4x8xf32>
    %30 = vector.multi_reduction <maximumf>, %29, %cst_14 [2] : vector<4x8x8xf32> to vector<4x8xf32>
    %31 = vector.shape_cast %30 : vector<4x8xf32> to vector<4x8x1xf32>
    %32 = vector.broadcast %31 : vector<4x8x1xf32> to vector<4x8x8xf32>
    %33 = arith.subf %29, %32 : vector<4x8x8xf32>
    %34 = math.exp %33 : vector<4x8x8xf32>
    %cst_15 = arith.constant dense<0.000000e+00> : vector<4x8xf32>
    %35 = vector.multi_reduction <add>, %34, %cst_15 [2] : vector<4x8x8xf32> to vector<4x8xf32>
    %36 = vector.shape_cast %35 : vector<4x8xf32> to vector<4x8x1xf32>
    %37 = tpu.reciprocal %36 {approx = true} : vector<4x8x1xf32> -> vector<4x8x1xf32>
    %38 = vector.broadcast %37 : vector<4x8x1xf32> to vector<4x8x8xf32>
    %39 = arith.mulf %34, %38 : vector<4x8x8xf32>
    "tpu.trace_start"() <{level = 10 : i32, message = "hqk,hkd->hqd"}> : () -> ()
    %cst_16 = arith.constant dense<0.000000e+00> : vector<4x8x8xf32>
    %40 = tpu.matmul %39, %26, %cst_16 {dimension_numbers = #tpu.dot_dimension_numbers<[2], [1], [1], [2], [0, 0, 0, 1, 1, 2], [0], [0]>} : vector<4x8x8xf32>, vector<4x8x8xf32>, vector<4x8x8xf32> -> vector<4x8x8xf32>
    "tpu.trace_stop"() : () -> ()
    %41 = arith.truncf %40 : vector<4x8x8xf32> to vector<4x8x8xbf16>
    %c0_17 = arith.constant 0 : index
    %c0_18 = arith.constant 0 : index
    %c0_19 = arith.constant 0 : index
    %c0_20 = arith.constant 0 : index
    %42 = vector.load %arg7[%c0_17, %c0_18, %c0_19, %c0_20] : memref<1x4x8x32xbf16, #tpu.memory_space<vmem>>, vector<1x4x8x32xbf16>
    %43 = vector.shape_cast %42 : vector<1x4x8x32xbf16> to vector<4x8x32xbf16>
    "tpu.trace_start"() <{level = 10 : i32, message = "hqd,hde->hqe"}> : () -> ()
    %cst_21 = arith.constant dense<0.000000e+00> : vector<4x8x32xf32>
    %44 = tpu.matmul %41, %43, %cst_21 {dimension_numbers = #tpu.dot_dimension_numbers<[2], [1], [1], [2], [0, 0, 0, 1, 1, 2], [0], [0]>} : vector<4x8x8xbf16>, vector<4x8x32xbf16>, vector<4x8x32xf32> -> vector<4x8x32xf32>
    "tpu.trace_stop"() : () -> ()
    %cst_22 = arith.constant dense<0.000000e+00> : vector<8x32xf32>
    %45 = vector.multi_reduction <add>, %44, %cst_22 [0] : vector<4x8x32xf32> to vector<8x32xf32>
    %c0_23 = arith.constant 0 : index
    %c0_24 = arith.constant 0 : index
    %c0_25 = arith.constant 0 : index
    %46 = vector.load %arg8[%c0_23, %c0_24, %c0_25] : memref<1x1x32xf32, #tpu.memory_space<vmem>>, vector<1x1x32xf32>
    %47 = vector.shape_cast %46 : vector<1x1x32xf32> to vector<1x32xf32>
    %48 = vector.broadcast %47 : vector<1x32xf32> to vector<8x32xf32>
    %49 = arith.addf %45, %48 : vector<8x32xf32>
    %50 = arith.addf %3, %49 : vector<8x32xf32>
    %c0_26 = arith.constant 0 : index
    %c0_27 = arith.constant 0 : index
    %c0_28 = arith.constant 0 : index
    %51 = vector.load %arg9[%c0_26, %c0_27, %c0_28] : memref<1x1x32xf32, #tpu.memory_space<vmem>>, vector<1x1x32xf32>
    %52 = vector.shape_cast %51 : vector<1x1x32xf32> to vector<1x32xf32>
    %c0_29 = arith.constant 0 : index
    %c0_30 = arith.constant 0 : index
    %c0_31 = arith.constant 0 : index
    %53 = vector.load %arg10[%c0_29, %c0_30, %c0_31] : memref<1x1x32xf32, #tpu.memory_space<vmem>>, vector<1x1x32xf32>
    %54 = vector.shape_cast %53 : vector<1x1x32xf32> to vector<1x32xf32>
    %cst_32 = arith.constant dense<0.000000e+00> : vector<8xf32>
    %55 = vector.multi_reduction <add>, %50, %cst_32 [1] : vector<8x32xf32> to vector<8xf32>
    %56 = vector.shape_cast %55 : vector<8xf32> to vector<8x1xf32>
    %cst_33 = arith.constant 3.200000e+01 : f32
    %57 = vector.broadcast %cst_33 : f32 to vector<8x1xf32>
    %58 = arith.divf %56, %57 : vector<8x1xf32>
    %59 = vector.broadcast %58 : vector<8x1xf32> to vector<8x32xf32>
    %60 = arith.subf %50, %59 : vector<8x32xf32>
    %61 = arith.mulf %60, %60 : vector<8x32xf32>
    %cst_34 = arith.constant dense<0.000000e+00> : vector<8xf32>
    %62 = vector.multi_reduction <add>, %61, %cst_34 [1] : vector<8x32xf32> to vector<8xf32>
    %63 = vector.shape_cast %62 : vector<8xf32> to vector<8x1xf32>
    %cst_35 = arith.constant 3.200000e+01 : f32
    %64 = vector.broadcast %cst_35 : f32 to vector<8x1xf32>
    %65 = arith.divf %63, %64 : vector<8x1xf32>
    %66 = vector.broadcast %58 : vector<8x1xf32> to vector<8x32xf32>
    %67 = arith.subf %50, %66 : vector<8x32xf32>
    %cst_36 = arith.constant 9.99999974E-6 : f32
    %68 = vector.broadcast %cst_36 : f32 to vector<8x1xf32>
    %69 = arith.addf %65, %68 : vector<8x1xf32>
    %70 = math.rsqrt %69 : vector<8x1xf32>
    %71 = vector.broadcast %70 : vector<8x1xf32> to vector<8x32xf32>
    %72 = arith.mulf %67, %71 : vector<8x32xf32>
    %73 = vector.broadcast %52 : vector<1x32xf32> to vector<8x32xf32>
    %74 = arith.mulf %72, %73 : vector<8x32xf32>
    %75 = vector.broadcast %54 : vector<1x32xf32> to vector<8x32xf32>
    %76 = arith.addf %74, %75 : vector<8x32xf32>
    %77 = arith.truncf %76 : vector<8x32xf32> to vector<8x32xbf16>
    %c0_37 = arith.constant 0 : index
    %c0_38 = arith.constant 0 : index
    %c0_39 = arith.constant 0 : index
    %78 = vector.load %arg11[%c0_37, %c0_38, %c0_39] : memref<1x32x128xbf16, #tpu.memory_space<vmem>>, vector<1x32x128xbf16>
    %79 = vector.shape_cast %78 : vector<1x32x128xbf16> to vector<32x128xbf16>
    %cst_40 = arith.constant dense<0.000000e+00> : vector<8x128xf32>
    %80 = tpu.matmul %77, %79, %cst_40 {dimension_numbers = #tpu.dot_dimension_numbers<[1], [0], [0], [1], [0, 0, 1, 1], [], []>} : vector<8x32xbf16>, vector<32x128xbf16>, vector<8x128xf32> -> vector<8x128xf32>
    %c0_41 = arith.constant 0 : index
    %c0_42 = arith.constant 0 : index
    %c0_43 = arith.constant 0 : index
    %81 = vector.load %arg12[%c0_41, %c0_42, %c0_43] : memref<1x1x128xf32, #tpu.memory_space<vmem>>, vector<1x1x128xf32>
    %82 = vector.shape_cast %81 : vector<1x1x128xf32> to vector<1x128xf32>
    %83 = vector.broadcast %82 : vector<1x128xf32> to vector<8x128xf32>
    %84 = arith.addf %80, %83 : vector<8x128xf32>
    %cst_44 = arith.constant 0.000000e+00 : f32
    %85 = vector.broadcast %cst_44 : f32 to vector<8x128xf32>
    %86 = arith.maximumf %84, %85 : vector<8x128xf32>
    %87 = arith.truncf %86 : vector<8x128xf32> to vector<8x128xbf16>
    %c0_45 = arith.constant 0 : index
    %c0_46 = arith.constant 0 : index
    %c0_47 = arith.constant 0 : index
    %88 = vector.load %arg13[%c0_45, %c0_46, %c0_47] : memref<1x128x32xbf16, #tpu.memory_space<vmem>>, vector<1x128x32xbf16>
    %89 = vector.shape_cast %88 : vector<1x128x32xbf16> to vector<128x32xbf16>
    %cst_48 = arith.constant dense<0.000000e+00> : vector<8x32xf32>
    %90 = tpu.matmul %87, %89, %cst_48 {dimension_numbers = #tpu.dot_dimension_numbers<[1], [0], [0], [1], [0, 0, 1, 1], [], []>} : vector<8x128xbf16>, vector<128x32xbf16>, vector<8x32xf32> -> vector<8x32xf32>
    %c0_49 = arith.constant 0 : index
    %c0_50 = arith.constant 0 : index
    %c0_51 = arith.constant 0 : index
    %91 = vector.load %arg14[%c0_49, %c0_50, %c0_51] : memref<1x1x32xf32, #tpu.memory_space<vmem>>, vector<1x1x32xf32>
    %92 = vector.shape_cast %91 : vector<1x1x32xf32> to vector<1x32xf32>
    %93 = vector.broadcast %92 : vector<1x32xf32> to vector<8x32xf32>
    %94 = arith.addf %90, %93 : vector<8x32xf32>
    %95 = arith.addf %76, %94 : vector<8x32xf32>
    %c0_52 = arith.constant 0 : index
    %c0_53 = arith.constant 0 : index
    %c0_54 = arith.constant 0 : index
    %96 = vector.load %arg15[%c0_52, %c0_53, %c0_54] : memref<1x1x32xf32, #tpu.memory_space<vmem>>, vector<1x1x32xf32>
    %97 = vector.shape_cast %96 : vector<1x1x32xf32> to vector<1x32xf32>
    %c0_55 = arith.constant 0 : index
    %c0_56 = arith.constant 0 : index
    %c0_57 = arith.constant 0 : index
    %98 = vector.load %arg16[%c0_55, %c0_56, %c0_57] : memref<1x1x32xf32, #tpu.memory_space<vmem>>, vector<1x1x32xf32>
    %99 = vector.shape_cast %98 : vector<1x1x32xf32> to vector<1x32xf32>
    %cst_58 = arith.constant dense<0.000000e+00> : vector<8xf32>
    %100 = vector.multi_reduction <add>, %95, %cst_58 [1] : vector<8x32xf32> to vector<8xf32>
    %101 = vector.shape_cast %100 : vector<8xf32> to vector<8x1xf32>
    %cst_59 = arith.constant 3.200000e+01 : f32
    %102 = vector.broadcast %cst_59 : f32 to vector<8x1xf32>
    %103 = arith.divf %101, %102 : vector<8x1xf32>
    %104 = vector.broadcast %103 : vector<8x1xf32> to vector<8x32xf32>
    %105 = arith.subf %95, %104 : vector<8x32xf32>
    %106 = arith.mulf %105, %105 : vector<8x32xf32>
    %cst_60 = arith.constant dense<0.000000e+00> : vector<8xf32>
    %107 = vector.multi_reduction <add>, %106, %cst_60 [1] : vector<8x32xf32> to vector<8xf32>
    %108 = vector.shape_cast %107 : vector<8xf32> to vector<8x1xf32>
    %cst_61 = arith.constant 3.200000e+01 : f32
    %109 = vector.broadcast %cst_61 : f32 to vector<8x1xf32>
    %110 = arith.divf %108, %109 : vector<8x1xf32>
    %111 = vector.broadcast %103 : vector<8x1xf32> to vector<8x32xf32>
    %112 = arith.subf %95, %111 : vector<8x32xf32>
    %cst_62 = arith.constant 9.99999974E-6 : f32
    %113 = vector.broadcast %cst_62 : f32 to vector<8x1xf32>
    %114 = arith.addf %110, %113 : vector<8x1xf32>
    %115 = math.rsqrt %114 : vector<8x1xf32>
    %116 = vector.broadcast %115 : vector<8x1xf32> to vector<8x32xf32>
    %117 = arith.mulf %112, %116 : vector<8x32xf32>
    %118 = vector.broadcast %97 : vector<1x32xf32> to vector<8x32xf32>
    %119 = arith.mulf %117, %118 : vector<8x32xf32>
    %120 = vector.broadcast %99 : vector<1x32xf32> to vector<8x32xf32>
    %121 = arith.addf %119, %120 : vector<8x32xf32>
    %c0_63 = arith.constant 0 : index
    %c0_64 = arith.constant 0 : index
    %122 = vector.load %arg20[%c0_63, %c0_64] : memref<8x32xf32, #tpu.memory_space<vmem>>, vector<8x32xf32>
    tpu.vector_store %arg20[%c0_63, %c0_64], %121 {strides = array<i32>} : memref<8x32xf32, #tpu.memory_space<vmem>>, vector<8x32xf32>,
    %c1_i32 = arith.constant 1 : i32
    %123 = arith.cmpi eq, %arg1, %c1_i32 : i32
    %124 = arith.extui %123 : i1 to i32
    %c0_i32_65 = arith.constant 0 : i32
    %125 = arith.cmpi ne, %124, %c0_i32_65 : i32
    scf.if %125 {
      %126 = arith.truncf %121 : vector<8x32xf32> to vector<8x32xbf16>
      %c0_66 = arith.constant 0 : index
      %c0_67 = arith.constant 0 : index
      %127 = vector.load %arg17[%c0_66, %c0_67] : memref<32x128xbf16, #tpu.memory_space<vmem>>, vector<32x128xbf16>
      %cst_68 = arith.constant dense<0.000000e+00> : vector<8x128xf32>
      %128 = tpu.matmul %126, %127, %cst_68 {dimension_numbers = #tpu.dot_dimension_numbers<[1], [0], [0], [1], [0, 0, 1, 1], [], []>} : vector<8x32xbf16>, vector<32x128xbf16>, vector<8x128xf32> -> vector<8x128xf32>
      %c0_69 = arith.constant 0 : index
      %c0_70 = arith.constant 0 : index
      %129 = vector.load %arg18[%c0_69, %c0_70] : memref<1x128xf32, #tpu.memory_space<vmem>>, vector<1x128xf32>
      %130 = vector.broadcast %129 : vector<1x128xf32> to vector<8x128xf32>
      %131 = arith.addf %128, %130 : vector<8x128xf32>
      %c0_71 = arith.constant 0 : index
      %c0_72 = arith.constant 0 : index
      %132 = vector.load %arg19[%c0_71, %c0_72] : memref<8x128xf32, #tpu.memory_space<vmem>>, vector<8x128xf32>
      tpu.vector_store %arg19[%c0_71, %c0_72], %131 {strides = array<i32>} : memref<8x128xf32, #tpu.memory_space<vmem>>, vector<8x128xf32>,
    } else {
    }
    return
  }
  func.func @transform_0(%arg0: i32, %arg1: i32) -> (i32, i32) {
    %c0_i32 = arith.constant 0 : i32
    %c0_i32_0 = arith.constant 0 : i32
    return %arg0, %c0_i32 : i32, i32
  }
  func.func @transform_1(%arg0: i32, %arg1: i32) -> (i32, i32) {
    %c0_i32 = arith.constant 0 : i32
    %c0_i32_0 = arith.constant 0 : i32
    %c0_i32_1 = arith.constant 0 : i32
    return %c0_i32, %c0_i32_0 : i32, i32
  }
  func.func @transform_2(%arg0: i32, %arg1: i32) -> (i32, i32) {
    %c0_i32 = arith.constant 0 : i32
    %c0_i32_0 = arith.constant 0 : i32
    %c0_i32_1 = arith.constant 0 : i32
    return %c0_i32, %c0_i32_0 : i32, i32
  }
  func.func @transform_3(%arg0: i32, %arg1: i32) -> (i32, i32, i32, i32) {
    %c0_i32 = arith.constant 0 : i32
    %c0_i32_0 = arith.constant 0 : i32
    %c0_i32_1 = arith.constant 0 : i32
    %c0_i32_2 = arith.constant 0 : i32
    return %arg1, %c0_i32, %c0_i32_0, %c0_i32_1 : i32, i32, i32, i32
  }
  func.func @transform_4(%arg0: i32, %arg1: i32) -> (i32, i32, i32, i32) {
    %c0_i32 = arith.constant 0 : i32
    %c0_i32_0 = arith.constant 0 : i32
    %c0_i32_1 = arith.constant 0 : i32
    %c0_i32_2 = arith.constant 0 : i32
    return %arg1, %c0_i32, %c0_i32_0, %c0_i32_1 : i32, i32, i32, i32
  }
  func.func @transform_5(%arg0: i32, %arg1: i32) -> (i32, i32, i32, i32) {
    %c0_i32 = arith.constant 0 : i32
    %c0_i32_0 = arith.constant 0 : i32
    %c0_i32_1 = arith.constant 0 : i32
    %c0_i32_2 = arith.constant 0 : i32
    return %arg1, %c0_i32, %c0_i32_0, %c0_i32_1 : i32, i32, i32, i32
  }
  func.func @transform_6(%arg0: i32, %arg1: i32) -> (i32, i32, i32) {
    %c0_i32 = arith.constant 0 : i32
    %c0_i32_0 = arith.constant 0 : i32
    %c0_i32_1 = arith.constant 0 : i32
    return %arg1, %c0_i32, %c0_i32_0 : i32, i32, i32
  }
  func.func @transform_7(%arg0: i32, %arg1: i32) -> (i32, i32, i32) {
    %c0_i32 = arith.constant 0 : i32
    %c0_i32_0 = arith.constant 0 : i32
    %c0_i32_1 = arith.constant 0 : i32
    return %arg1, %c0_i32, %c0_i32_0 : i32, i32, i32
  }
  func.func @transform_8(%arg0: i32, %arg1: i32) -> (i32, i32, i32) {
    %c0_i32 = arith.constant 0 : i32
    %c0_i32_0 = arith.constant 0 : i32
    %c0_i32_1 = arith.constant 0 : i32
    return %arg1, %c0_i32, %c0_i32_0 : i32, i32, i32
  }
  func.func @transform_9(%arg0: i32, %arg1: i32) -> (i32, i32, i32) {
    %c0_i32 = arith.constant 0 : i32
    %c0_i32_0 = arith.constant 0 : i32
    %c0_i32_1 = arith.constant 0 : i32
    return %arg1, %c0_i32, %c0_i32_0 : i32, i32, i32
  }
  func.func @transform_10(%arg0: i32, %arg1: i32) -> (i32, i32, i32) {
    %c0_i32 = arith.constant 0 : i32
    %c0_i32_0 = arith.constant 0 : i32
    %c0_i32_1 = arith.constant 0 : i32
    return %arg1, %c0_i32, %c0_i32_0 : i32, i32, i32
  }
  func.func @transform_11(%arg0: i32, %arg1: i32) -> (i32, i32, i32) {
    %c0_i32 = arith.constant 0 : i32
    %c0_i32_0 = arith.constant 0 : i32
    %c0_i32_1 = arith.constant 0 : i32
    return %arg1, %c0_i32, %c0_i32_0 : i32, i32, i32
  }
  func.func @transform_12(%arg0: i32, %arg1: i32) -> (i32, i32, i32) {
    %c0_i32 = arith.constant 0 : i32
    %c0_i32_0 = arith.constant 0 : i32
    %c0_i32_1 = arith.constant 0 : i32
    return %arg1, %c0_i32, %c0_i32_0 : i32, i32, i32
  }
  func.func @transform_13(%arg0: i32, %arg1: i32) -> (i32, i32, i32) {
    %c0_i32 = arith.constant 0 : i32
    %c0_i32_0 = arith.constant 0 : i32
    %c0_i32_1 = arith.constant 0 : i32
    return %arg1, %c0_i32, %c0_i32_0 : i32, i32, i32
  }
  func.func @transform_14(%arg0: i32, %arg1: i32) -> (i32, i32, i32) {
    %c0_i32 = arith.constant 0 : i32
    %c0_i32_0 = arith.constant 0 : i32
    %c0_i32_1 = arith.constant 0 : i32
    return %arg1, %c0_i32, %c0_i32_0 : i32, i32, i32
  }
  func.func @transform_15(%arg0: i32, %arg1: i32) -> (i32, i32) {
    %c0_i32 = arith.constant 0 : i32
    %c0_i32_0 = arith.constant 0 : i32
    %c0_i32_1 = arith.constant 0 : i32
    return %c0_i32, %c0_i32_0 : i32, i32
  }
  func.func @transform_16(%arg0: i32, %arg1: i32) -> (i32, i32) {
    %c0_i32 = arith.constant 0 : i32
    %c0_i32_0 = arith.constant 0 : i32
    %c0_i32_1 = arith.constant 0 : i32
    return %c0_i32, %c0_i32_0 : i32, i32
  }
  func.func @transform_17(%arg0: i32, %arg1: i32) -> (i32, i32) {
    %c0_i32 = arith.constant 0 : i32
    %c0_i32_0 = arith.constant 0 : i32
    return %arg0, %c0_i32 : i32, i32
  }
}

</mosaic_0001>

<bundles_post_ra>
// kernel: tpu_custom_call.1
= control target key start
LH: loop header
LB: loop body
LE: loop exit
PB: predicated region body
PF: predicated region fallthrough
CT: control target
= control target key end

     0   :  { %s4262_s0 = inlined_call_operand.vmem [shape: s32[16,1], index: 0, kind: input, shape index: {}]   ;;  %s4263_s1 = inlined_call_operand.vmem [shape: bf16[128,32], index: 1, kind: input, shape index: {}]   ;;  %s4264_s2 = inlined_call_operand.vmem [shape: f32[8,32], index: 2, kind: input, shape index: {}]   ;;  %s4265_s3 = inlined_call_operand.vmem [shape: bf16[2,12,32,8], index: 3, kind: input, shape index: {}]   ;;  %s4266_s4 = inlined_call_operand.vmem [shape: f32[2,12,1,8], index: 4, kind: input, shape index: {}]   ;;  %s4267_s5 = inlined_call_operand.vmem [shape: bf16[2,4,8,32], index: 5, kind: input, shape index: {}]   ;;  %s4268_s6 = inlined_call_operand.vmem [shape: f32[2,1,32], index: 6, kind: input, shape index: {}]   ;;  %s4269_s7 = inlined_call_operand.vmem [shape: f32[2,1,32], index: 7, kind: input, shape index: {}]   ;;  %s4270_s8 = inlined_call_operand.vmem [shape: f32[2,1,32], index: 8, kind: input, shape index: {}]   ;;  %s4271_s9 = inlined_call_operand.vmem [shape: bf16[2,32,128], index: 9, kind: input, shape index: {}]   ;;  %s4272_s10 = inlined_call_operand.vmem [shape: f32[2,1,128], index: 10, kind: input, shape index: {}]   ;;  %s4273_s11 = inlined_call_operand.vmem [shape: bf16[2,128,32], index: 11, kind: input, shape index: {}]   ;;  %s4274_s12 = inlined_call_operand.vmem [shape: f32[2,1,32], index: 12, kind: input, shape index: {}]   ;;  %s4275_s13 = inlined_call_operand.vmem [shape: f32[2,1,32], index: 13, kind: input, shape index: {}]   ;;  %s4276_s14 = inlined_call_operand.vmem [shape: f32[2,1,32], index: 14, kind: input, shape index: {}]   ;;  %s4277_s15 = inlined_call_operand.vmem [shape: bf16[32,128], index: 15, kind: input, shape index: {}]   ;;  %s4278_s16 = inlined_call_operand.vmem [shape: f32[1,128], index: 16, kind: input, shape index: {}]   ;;  %s4279_s17 = inlined_call_operand.hbm [shape: f32[16,128], index: 17, kind: output, shape index: {}]  }
   0x1   :  { %4297 = sst [smem:[#allocation19_spill]] %s4262_s0 }
   0x2   :  { %4298 = sst [smem:[#allocation20_spill]] %s4263_s1 }
   0x3   :  { %4299 = sst [smem:[#allocation21_spill]] %s4264_s2 }
   0x4   :  { %4300 = sst [smem:[#allocation22_spill]] %s4265_s3 }
   0x5   :  { %4301 = sst [smem:[#allocation23_spill]] %s4266_s4 }
   0x6   :  { %4302 = sst [smem:[#allocation24_spill]] %s4267_s5 }
   0x7   :  { %4303 = sst [smem:[#allocation25_spill]] %s4271_s9 }
   0x8   :  { %4304 = sst [smem:[#allocation26_spill]] %s4276_s14 }
   0x9   :  { %4305 = sst [smem:[#allocation27_spill]] %s4277_s15 }
   0xa   :  { %4306 = sst [smem:[#allocation28_spill]] %s4278_s16 }
   0xb   :  { %4307 = sst [smem:[#allocation29_spill]] %s4279_s17 }
   0xc   :  { %22 = vsyncpa [#allocation4], 0 }
   0xd   :  { %24 = vsyncpa [#allocation4 + $0x1], 0  ;;  %s3770_s24 = smov 0   ;;  %s3772_s25 = smov 0  }
   0xe   :  { %s3774_s26 = smov 0   ;;  %s3776_s27 = smov 0  }
   0xf   :  { %s3778_s28 = smov 0   ;;  %s3780_s29 = smov 0  }
  0x10   :  { %s3782_s0 = smov 0   ;;  %s3784_s30 = smov 0  }
  0x11 LB: > { %4308 = sst [smem:[#allocation6_spill]] %s3641_s24  ;;  %s3009_s18 = sadd.s32 4294967295, %s3669_s30   ;;  %s3669_s30 = sphi %s3784_s30, %s30_s30   ;;  %s3665_s0 = sphi %s3782_s0, %s4354_s0   ;;  %s3661_s29 = sphi %s3780_s29, %s4353_s29   ;;  %s3657_s28 = sphi %s3778_s28, %s4352_s28   ;;  %s3653_s27 = sphi %s3776_s27, %s4351_s27   ;;  %s3649_s26 = sphi %s3774_s26, %s4350_s26   ;;  %s3645_s25 = sphi %s3772_s25, %s4349_s25   ;;  %s3641_s24 = sphi %s3770_s24, %s4348_s24  }
  0x12   : > { %4309 = sst [smem:[#allocation7_spill]] %s3645_s25  ;;  %s3010_s19 = sadd.s32 4294967294, %s3669_s30  }
  0x13   : > { %4310 = sst [smem:[#allocation8_spill]] %s3649_s26  ;;  %s39_s1 = sadd.s32 1, %s3661_s29 }
  0x14   : > { %4311 = sst [smem:[#allocation9_spill]] %s3653_s27  ;;  %p40_p0 = scmp.ge.s32.totalorder %s39_s1, 2 }
  0x15   : > { %4312 = sst [smem:[#allocation10_spill]] %s3657_s28  ;;  %s42_s20 = sadd.s32 1, %s3665_s0 }
  0x16   : > { %4313 = sst [smem:[#allocation11_spill]] %s3661_s29  ;;  %p481_p1 = scmp.ne.s32.totalorder %s3649_s26, %s3645_s25 }
  0x17   : > { %4314 = sst [smem:[#allocation12_spill]] %s3665_s0  ;;  %p482_p2 = scmp.eq.s32.totalorder %s3009_s18, 3 }
  0x18   : > { %4315 = sst [smem:[#allocation13_spill]] %s3669_s30  ;;  %s4356_s1 = smov (%p40_p0, %s39_s1), 0 }
  0x19   : > { %4316 = sst [smem:[#allocation14_spill]] %s4356_s1  ;;  %s4358_s20 = smov (!%p40_p0, %s42_s20), %s3665_s0 }
  0x1a   : > { %p3819_p3 = por %p482_p2, %p481_p1  ;;  %p487_p4 = scmp.ne.s32.totalorder %s3645_s25, %s3641_s24 }
  0x1b   : > { %p44_p5 = scmp.ge.s32.totalorder %s4358_s20, 2  ;;  %p488_p6 = scmp.eq.s32.totalorder %s3010_s19, 3 }
  0x1c   : > { %s4317_s21 = scalar_select %p3819_p3, 1, 0 }
  0x1d   : > { %p3013_p7 = scmp.ge.s32.totalorder %s3669_s30, 1  ;;  %p606_p8 = scmp.lt.s32.totalorder %s3669_s30, 5 }
  0x1e   : > { %4318 = sst [smem:[#allocation15_spill]] %s4317_s21  ;;  %s4360_s20 = smov (%p44_p5, %s4358_s20), 0 }
  0x1f   : > { %4319 = sst [smem:[#allocation16_spill]] %s4360_s20  ;;  %p3829_p9 = por %p488_p6, %p487_p4 }
  0x20   : > { %p607_p10 = pnand %p3013_p7, %p606_p8  ;;  %s468_s23 = ssub.s32 %s3665_s0, %s4360_s20 }
  0x21   : > { %s4320_s22 = scalar_select %p3829_p9, 1, 0 }
  0x22   : > { %s471_s18 = sadd.s32 1, %s3649_s26  ;;  %p469_p11 = scmp.eq.s32.totalorder %s468_s23, 0 }
  0x23   : > { %4321 = sst [smem:[#allocation17_spill]] %s4320_s22  ;;  %610 = sbr.rel (%p607_p10) target bundleno = 2932 (0xb74), region = 88 }
  0x24   : > { %s3837_s1 = scalar_select %p469_p11, %s3649_s26, %s471_s18  }
  0x25   : > { %s4286_s19 = sand.u32 (!%p607_p10), 1, %s3645_s25   ;;  %p702_p12 = scmp.lt.s32.totalorder (!%p607_p10), %s3657_s28, 1 }
  0x26   : > { %4322 = sst [smem:[#allocation18_spill]] %s3837_s1  ;;  %s3843_s29 = sshll.u32 (!%p607_p10), %s4286_s19, 3 }
  0x27   : > { %p706_p13 = scmp.lt.s32.totalorder (!%p607_p10), %s3653_s27, 1  ;;  %s4323_s0 = sld [smem:[#allocation19_spill]] (!%p607_p10) }
  0x28   : > { %s4324_s3 = sld [smem:[#allocation22_spill]] (!%p607_p10)  ;;  %s4325_s5 = sld [smem:[#allocation24_spill]] (!%p607_p10) }
  0x29   : > { %s4326_s4 = sld [smem:[#allocation23_spill]] (!%p607_p10)  ;;  %s4327_s9 = sld [smem:[#allocation25_spill]] (!%p607_p10) }
  0x2a   : > { %s703_s22 = scalar_select %p702_p12, %s3657_s28, 1 }
  0x2b   : > { %s3848_s24 = scalar_select %p706_p13, %s3653_s27, 1 }
  0x2c   : > { %s3015_s23 = sshll.u32 %s703_s22, 3  ;;  %s701_s2 = scalar_lea.vmem [#allocation3], %s3843_s29 }
  0x2d   : > { %s705_s19 = scalar_lea.vmem %s4323_s0, %s3015_s23  ;;  %s3429_s1 = smul.u32 192, %s3848_s24 }
  0x2e   : > { %s3430_s26 = smul.u32 12, %s3848_s24  ;;  %s3126_s30 = sshll.u32 %s3848_s24, 4 }
  0x2f   : > { %s3859_s25 = scalar_lea.vmem %s4324_s3, %s3429_s1  ;;  %s3864_s15 = scalar_lea.vmem %s4325_s5, %s3126_s30 }
  0x30   : > { %s3869_s20 = scalar_lea.vmem %s4326_s4, %s3430_s26  ;;  %s3886_s5 = scalar_lea.vmem %s4327_s9, %s3126_s30 }
  0x31   : > { %s736_s22 = scalar_lea.vmem %s4272_s10, %s3848_s24  ;;  %s3128_s4 = sshll.u32 %s3848_s24, 6 }
  0x32   : > { %s3900_s17 = scalar_lea.vmem %s4273_s11, %s3128_s4  ;;  %s747_s16 = scalar_lea.vmem %s4275_s13, %s3848_s24 }
  0x33   : > { %s4328_s3 = sld [smem:[#allocation26_spill]]  ;;  %s4329_s26 = sld [smem:[#allocation9_spill]] }
  0x39   : > { %s750_s9 = scalar_lea.vmem %s4328_s3, %s3848_s24  ;;  %p3023_p0 = scmp.ne.s32.totalorder %s4329_s26, 0 }
  0x3a   : > { %v756_v0 = vld [vmem:[%s705_s19] sm:$0xff] (!%p3023_p0)  ;;  %s4330_s18 = sld [smem:[#allocation20_spill]] (!%p3023_p0)  ;;  %v3671_v2 = vmov (!%p3023_p0), 0   ;;  %v3672_v3 = vmov (!%p3023_p0), 0.0   ;;  %vm3673_vm0 = vmmov (!%p3023_p0), 0   ;;  %v757_v11 = vlaneseq (!%p3023_p0)  ;;  %s4331_s27 = sld [smem:[#allocation21_spill]] (!%p3023_p0) }
  0x3b   : > { %755 = sbr.rel (%p3023_p0) target bundleno = 405 (0x195), region = 92  ;;  %3510 = vset.pattern.permute.xlu0 (!%p3023_p0), %v3671_v2  ;;  %3213 = vmatprep.subr.bf16.mxu0 (!%p3023_p0), %v3672_v3  ;;  %v3674_v14 = vmov (!%p3023_p0), 1.0|1.0   ;;  %vm871_vm3 = vcmask (!%p3023_p0), 261120  }
  0x3c   : > { %760 = vperm.xlu0 (!%p3023_p0), %3510, %v756_v0   ;;  %3229 = vmatprep.mubr.msk.bf16.mxu0 (!%p3023_p0), %vm3673_vm0, %v3672_v3  ;;  %v758_v12 = vand.u32 (!%p3023_p0), 127, %v757_v11 }
  0x40   : > { %v3511_v1 = vld [vmem:[%s4330_s18] sm:$0xff] (!%p3023_p0)   ;;  %v3512_v4 = vld [vmem:[%s4330_s18 + $0x8] sm:$0xff] (!%p3023_p0)   ;;  %v3513_v5 = vld [vmem:[%s4330_s18 + $0x10] sm:$0xff] (!%p3023_p0)  }
  0x41   : > { %3214 = vmatpush3.bf16.msra.mxu0 (!%p3023_p0), %v3511_v1  ;;  %v3514_v6 = vld [vmem:[%s4330_s18 + $0x18] sm:$0xff] (!%p3023_p0)   ;;  %v3515_v7 = vld [vmem:[%s4330_s18 + $0x20] sm:$0xff] (!%p3023_p0)   ;;  %v3516_v8 = vld [vmem:[%s4330_s18 + $0x28] sm:$0xff] (!%p3023_p0)  }
  0x42   : > { %3215 = vmatprep.subr.bf16.mxu0 %v3672_v3  ;;  %v3517_v9 = vld [vmem:[%s4330_s18 + $0x30] sm:$0xff]   ;;  %v3518_v10 = vld [vmem:[%s4330_s18 + $0x38] sm:$0xff]   ;;  %v782_v15 = vld [vmem:[%s4331_s27] sm:$0xff] }
  0x45   : > { %3216 = vmatpush3.bf16.msra.mxu0 %v3512_v4 }
  0x46   : > { %3217 = vmatprep.subr.bf16.mxu0 %v3672_v3 }
  0x49   : > { %3218 = vmatpush3.bf16.msra.mxu0 %v3513_v5 }
  0x4a   : > { %3219 = vmatprep.subr.bf16.mxu0 %v3672_v3 }
  0x4d   : > { %3220 = vmatpush3.bf16.msra.mxu0 %v3514_v6 }
  0x4e   : > { %3221 = vmatprep.subr.bf16.mxu0 %v3672_v3 }
  0x51   : > { %3222 = vmatpush3.bf16.msra.mxu0 %v3515_v7 }
  0x52   : > { %3223 = vmatprep.subr.bf16.mxu0 %v3672_v3 }
  0x55   : > { %3224 = vmatpush3.bf16.msra.mxu0 %v3516_v8 }
  0x56   : > { %3225 = vmatprep.subr.bf16.mxu0 %v3672_v3 }
  0x59   : > { %3226 = vmatpush3.bf16.msra.mxu0 %v3517_v9 }
  0x5a   : > { %3227 = vmatprep.subr.bf16.mxu0 %v3672_v3 }
  0x5d   : > { %3228 = vmatpush3.bf16.msra.mxu0 %v3518_v10 }
  0xbb   : > { %v761_v13 = vpop.permute.xlu0 %760 }
  0xbc   : > { %vm762_vm1 = vcmp.eq.s32.totalorder %v758_v12, %v761_v13 }
  0xbd   : > { %vm3033_vm2 = vmpackc.low %vm762_vm1, %vm762_vm1 }
  0xbe   : > { %3230 = vmatmul.mubr.msk.bf16.vlgmr.msra.gmra.mrb[0].mxu0 %vm3033_vm2, %v3674_v14 }
 0x191   : > { %v865_v16 = vpop.f32.mrb[0].mxu0 }
 0x192   : > { %v866_v17 = vadd.f32 %v865_v16, %v782_v15  ;;  %v3231_v18 = vpop.f32.mrb[1].mxu0 }
 0x193   : > { %v868_v19 = vpop.f32.mrb[2].mxu0 }
 0x194   : > { %872 = vst.msk [vmem:[#allocation2] sm:$0xff] %vm871_vm3, %v866_v17  ;;  %v3232_v20 = vpop.f32.mrb[3].mxu0 }
 0x195 PF: > { %v3519_v21 = vld [vmem:[%s3859_s25] sm:$0xff]   ;;  %v3675_v22 = vmov 0.0   ;;  %v3520_v23 = vld [vmem:[%s3859_s25 + $0x30] sm:$0xff]   ;;  %v3521_v24 = vld [vmem:[%s3859_s25 + $0x8] sm:$0xff]   ;;  %vm3676_vm4 = vmmov 0   ;;  %vm971_vm5 = vcmask 261120   ;;  %s4333_s21 = scalar_lea.vmem %s4269_s7, %s3848_s24  ;;  %s4334_s26 = scalar_lea.vmem %s4270_s8, %s3848_s24 }
 0x196   : > { %3233 = vmatprep.subr.bf16.mxu0 %v3675_v22  ;;  %3257 = vmatprep.subr.bf16.mxu1 %v3675_v22  ;;  %v3522_v25 = vld [vmem:[%s3859_s25 + $0x38] sm:$0xff]   ;;  %v3523_v28 = vld [vmem:[%s3859_s25 + $0x10] sm:$0xff]   ;;  %v3527_v32 = vld [vmem:[%s3859_s25 + $0x20] sm:$0xff]   ;;  %vm1635_vm6 = vcmask 64512   ;;  %vm2291_vm7 = vcmask 1043456   ;;  %s4335_s3 = scalar_lea.vmem %s4274_s12, %s3848_s24 }
 0x197   : > { %3234 = vmatpush3.bf16.msra.mxu0 %v3519_v21  ;;  %3237 = vmatprep.mubr.msk.bf16.mxu0 %vm3676_vm4, %v3675_v22  ;;  %v3524_v29 = vld [vmem:[%s3859_s25 + $0x50] sm:$0xff]   ;;  %v3525_v30 = vld [vmem:[%s3859_s25 + $0x18] sm:$0xff]   ;;  %v3529_v34 = vld [vmem:[%s3859_s25 + $0x28] sm:$0xff]  }
 0x198   : > { %3258 = vmatpush3.bf16.msra.mxu1 %v3520_v23  ;;  %3235 = vmatprep.subr.bf16.mxu0 %v3675_v22  ;;  %v3526_v31 = vld [vmem:[%s3859_s25 + $0x58] sm:$0xff]   ;;  %v3528_v33 = vld [vmem:[%s3859_s25 + $0x70] sm:$0xff]   ;;  %v3531_v36 = vld [vmem:[%s3859_s25 + $0x40] sm:$0xff]  }
 0x199   : > { %3259 = vmatprep.subr.bf16.mxu1 %v3675_v22  ;;  %3261 = vmatprep.mubr.msk.bf16.mxu1 %vm3676_vm4, %v3675_v22  ;;  %v3530_v35 = vld [vmem:[%s3859_s25 + $0x78] sm:$0xff]   ;;  %v3535_v37 = vld [vmem:[%s3859_s25 + $0x90] sm:$0xff]   ;;  %v3532_v38 = vld [vmem:[%s3859_s25 + $0x48] sm:$0xff]  }
 0x19a   : > { %v3533_v39 = vld [vmem:[%s3859_s25 + $0x60] sm:$0xff]   ;;  %v3534_v40 = vld [vmem:[%s3859_s25 + $0x68] sm:$0xff]   ;;  %v3536_v41 = vld [vmem:[%s3859_s25 + $0x98] sm:$0xff]  }
 0x19b   : > { %v3951_v26 = vld [vmem:[#allocation2] sm:$0xff]  ;;  %3236 = vmatpush3.bf16.msra.mxu0 %v3521_v24  ;;  %v3538_v43 = vld [vmem:[%s3859_s25 + $0xb0] sm:$0xff]   ;;  %v3539_v44 = vld [vmem:[%s3859_s25 + $0x88] sm:$0xff]  }
 0x19c   : > { %v3955_v27 = vpack.c.bf16 %v3951_v26, %v3951_v26  ;;  %3260 = vmatpush3.bf16.msra.mxu1 %v3522_v25  ;;  %3241 = vmatprep.subr.bf16.mxu0 %v3675_v22  ;;  %v3537_v42 = vld [vmem:[%s3859_s25 + $0x80] sm:$0xff]   ;;  %v3540_v45 = vld [vmem:[%s3859_s25 + $0xb8] sm:$0xff]   ;;  %v3542_v47 = vld [vmem:[%s3859_s25 + $0xa8] sm:$0xff]  }
 0x19d   : > { %3273 = vmatprep.subr.bf16.mxu1 %v3675_v22  ;;  %v3541_v46 = vld [vmem:[%s3859_s25 + $0xa0] sm:$0xff]   ;;  %s4337_s25 = sld [smem:[#allocation9_spill]] }
 0x19e   : > { %3238 = vmatmul.mubr.msk.bf16.vlgmr.msra.gmra.mrb[0].mxu0 %vm971_vm5, %v3955_v27  ;;  %v3054_v0 = vld [vmem:[%s3869_s20 + $0x7] ss:$0 sm:$0xff]  ;;  %v3038_v1 = vld [vmem:[%s3869_s20 + $0x3] ss:$0 sm:$0xff]  ;;  %v3051_v12 = vld [vmem:[%s3869_s20 + $0x4] ss:$0 sm:$0xff] }
 0x19f   : > { %3262 = vmatmul.mubr.msk.bf16.vlgmr.msra.gmra.mrb[0].mxu1 %vm971_vm5, %v3955_v27  ;;  %3242 = vmatpush3.bf16.msra.mxu0 %v3523_v28  ;;  %v3052_v13 = vld [vmem:[%s3869_s20 + $0x5] ss:$0 sm:$0xff]  ;;  %v3035_v15 = vld [vmem:[%s3869_s20] ss:$0 sm:$0xff]  ;;  %v3036_v23 = vld [vmem:[%s3869_s20 + $0x1] ss:$0 sm:$0xff] }
 0x1a0   : > { %3274 = vmatpush3.bf16.msra.mxu1 %v3524_v29  ;;  %3243 = vmatprep.subr.bf16.mxu0 %v3675_v22  ;;  %v3053_v24 = vld [vmem:[%s3869_s20 + $0x6] ss:$0 sm:$0xff]  ;;  %v3037_v28 = vld [vmem:[%s3869_s20 + $0x2] ss:$0 sm:$0xff] }
 0x1a1   : > { %3275 = vmatprep.subr.bf16.mxu1 %v3675_v22  ;;  %3245 = vmatprep.mubr.msk.bf16.mxu0 %vm3676_vm4, %v3675_v22 }
 0x1a2   : > { %3277 = vmatprep.mubr.msk.bf16.mxu1 %vm3676_vm4, %v3675_v22 }
 0x1a3   : > { %3244 = vmatpush3.bf16.msra.mxu0 %v3525_v30  ;;  %p3117_p1 = scmp.ne.s32.totalorder %s4337_s25, 1 }
 0x1a4   : > { %3276 = vmatpush3.bf16.msra.mxu1 %v3526_v31  ;;  %3249 = vmatprep.subr.bf16.mxu0 %v3675_v22  ;;  %s4338_s1 = sld [smem:[#allocation27_spill]] (!%p3117_p1)  ;;  %vm3678_vm8 = vmmov (!%p3117_p1), 0   ;;  %s4339_s30 = sld [smem:[#allocation28_spill]] (!%p3117_p1) }
 0x1a5   : > { %3289 = vmatprep.subr.bf16.mxu1 %v3675_v22 }
 0x1a6   : > { %3246 = vmatmul.mubr.msk.bf16.vlgmr.msra.gmra.mrb[4].mxu0 %vm971_vm5, %v3955_v27 }
 0x1a7   : > { %3278 = vmatmul.mubr.msk.bf16.vlgmr.msra.gmra.mrb[4].mxu1 %vm971_vm5, %v3955_v27  ;;  %3250 = vmatpush3.bf16.msra.mxu0 %v3527_v32 }
 0x1a8   : > { %3290 = vmatpush3.bf16.msra.mxu1 %v3528_v33  ;;  %3251 = vmatprep.subr.bf16.mxu0 %v3675_v22 }
 0x1a9   : > { %3291 = vmatprep.subr.bf16.mxu1 %v3675_v22  ;;  %3253 = vmatprep.mubr.msk.bf16.mxu0 %vm3676_vm4, %v3675_v22 }
 0x1aa   : > { %3293 = vmatprep.mubr.msk.bf16.mxu1 %vm3676_vm4, %v3675_v22 }
 0x1ab   : > { %3252 = vmatpush3.bf16.msra.mxu0 %v3529_v34  ;;  %v3068_v34 = vld [vmem:[%s3869_s20 + $0x9] ss:$0 sm:$0xff] }
 0x1ac   : > { %3292 = vmatpush3.bf16.msra.mxu1 %v3530_v35  ;;  %3265 = vmatprep.subr.bf16.mxu0 %v3675_v22 }
 0x1ad   : > { %3305 = vmatprep.subr.bf16.mxu1 %v3675_v22 }
 0x1ae   : > { %3254 = vmatmul.mubr.msk.bf16.vlgmr.msra.gmra.mrb[8].mxu0 %vm971_vm5, %v3955_v27 }
 0x1af   : > { %3294 = vmatmul.mubr.msk.bf16.vlgmr.msra.gmra.mrb[8].mxu1 %vm971_vm5, %v3955_v27  ;;  %3266 = vmatpush3.bf16.msra.mxu0 %v3531_v36 }
 0x1b0   : > { %3267 = vmatprep.subr.bf16.mxu0 %v3675_v22  ;;  %3269 = vmatprep.mubr.msk.bf16.mxu0 %vm3676_vm4, %v3675_v22 }
 0x1b1   : > { %3306 = vmatpush3.bf16.msra.mxu1 %v3535_v37  ;;  %3309 = vmatprep.mubr.msk.bf16.mxu1 %vm3676_vm4, %v3675_v22 }
 0x1b2   : > { %3307 = vmatprep.subr.bf16.mxu1 %v3675_v22 }
 0x1b3   : > { %3268 = vmatpush3.bf16.msra.mxu0 %v3532_v38 }
 0x1b4   : > { %3281 = vmatprep.subr.bf16.mxu0 %v3675_v22 }
 0x1b5   : > { %3308 = vmatpush3.bf16.msra.mxu1 %v3536_v41 }
 0x1b6   : > { %3270 = vmatmul.mubr.msk.bf16.vlgmr.msra.gmra.mrb[12].mxu0 %vm971_vm5, %v3955_v27  ;;  %3321 = vmatprep.subr.bf16.mxu1 %v3675_v22 }
 0x1b7   : > { %3282 = vmatpush3.bf16.msra.mxu0 %v3533_v39  ;;  %3285 = vmatprep.mubr.msk.bf16.mxu0 %vm3676_vm4, %v3675_v22 }
 0x1b8   : > { %3283 = vmatprep.subr.bf16.mxu0 %v3675_v22  ;;  %3310 = vmatmul.mubr.msk.bf16.vlgmr.msra.gmra.mrb[12].mxu1 %vm971_vm5, %v3955_v27 }
 0x1b9   : > { %3322 = vmatpush3.bf16.msra.mxu1 %v3538_v43  ;;  %3325 = vmatprep.mubr.msk.bf16.mxu1 %vm3676_vm4, %v3675_v22 }
 0x1ba   : > { %3323 = vmatprep.subr.bf16.mxu1 %v3675_v22 }
 0x1bb   : > { %3284 = vmatpush3.bf16.msra.mxu0 %v3534_v40  ;;  %v3067_v40 = vld [vmem:[%s3869_s20 + $0x8] ss:$0 sm:$0xff] }
 0x1bc   : > { %3297 = vmatprep.subr.bf16.mxu0 %v3675_v22 }
 0x1bd   : > { %3324 = vmatpush3.bf16.msra.mxu1 %v3540_v45 }
 0x1be   : > { %3286 = vmatmul.mubr.msk.bf16.vlgmr.msra.gmra.mrb[16].mxu0 %vm971_vm5, %v3955_v27  ;;  %3344 = vmatprep.subr.mxu1 %v3675_v22 }
 0x1bf   : > { %3301 = vmatprep.mubr.msk.bf16.mxu0 %vm3676_vm4, %v3675_v22  ;;  %3298 = vmatpush3.bf16.msra.mxu0 %v3537_v42 }
 0x1c0   : > { %3299 = vmatprep.subr.bf16.mxu0 %v3675_v22  ;;  %3326 = vmatmul.mubr.msk.bf16.vlgmr.msra.gmra.mrb[16].mxu1 %vm971_vm5, %v3955_v27 }
 0x1c1   : > { %3346 = vmatprep.mubr.msk.f32.mxu1 %vm3676_vm4, %v3675_v22 }
 0x1c3   : > { %3300 = vmatpush3.bf16.msra.mxu0 %v3539_v44 }
 0x1c4   : > { %3313 = vmatprep.subr.bf16.mxu0 %v3675_v22 }
 0x1c6   : > { %3302 = vmatmul.mubr.msk.bf16.vlgmr.msra.gmra.mrb[20].mxu0 %vm971_vm5, %v3955_v27 }
 0x1c7   : > { %3314 = vmatpush3.bf16.msra.mxu0 %v3541_v46  ;;  %3317 = vmatprep.mubr.msk.bf16.mxu0 %vm3676_vm4, %v3675_v22 }
 0x1c8   : > { %3315 = vmatprep.subr.bf16.mxu0 %v3675_v22 }
 0x1cb   : > { %3316 = vmatpush3.bf16.msra.mxu0 %v3542_v47 }
 0x1cc   : > { %3329 = vmatprep.subr.mxu0 %v3675_v22 }
 0x1ce   : > { %3318 = vmatmul.mubr.msk.bf16.vlgmr.msra.gmra.mrb[24].mxu0 %vm971_vm5, %v3955_v27 }
 0x1cf   : > { %3331 = vmatprep.mubr.msk.f32.mxu0 %vm3676_vm4, %v3675_v22 }
 0x271   : > { %v1009_v48 = vpop.f32.mrb[0].mxu0 }
 0x272   : > { %v3239_v49 = vpop.f32.mrb[1].mxu0  ;;  %v1165_v50 = vpop.f32.mrb[0].mxu1  ;;  %v1010_v21 = vadd.f32 %v3035_v15, %v1009_v48 }
 0x273   : > { %v1012_v51 = vpop.f32.mrb[2].mxu0  ;;  %v3263_v52 = vpop.f32.mrb[1].mxu1  ;;  %v1166_v8 = vadd.f32 %v3038_v1, %v1165_v50 }
 0x274   : > { %v3240_v53 = vpop.f32.mrb[3].mxu0  ;;  %v1168_v54 = vpop.f32.mrb[2].mxu1 }
 0x275   : > { %v3264_v55 = vpop.f32.mrb[3].mxu1 }
 0x279   : > { %v1061_v56 = vpop.f32.mrb[4].mxu0 }
 0x27a   : > { %v3247_v57 = vpop.f32.mrb[5].mxu0  ;;  %v1293_v58 = vpop.f32.mrb[4].mxu1  ;;  %v1062_v25 = vadd.f32 %v3036_v23, %v1061_v56 }
 0x27b   : > { %v1064_v59 = vpop.f32.mrb[6].mxu0  ;;  %v3279_v60 = vpop.f32.mrb[5].mxu1  ;;  %v1294_v19 = vadd.f32 %v3052_v13, %v1293_v58 }
 0x27c   : > { %v3248_v61 = vpop.f32.mrb[7].mxu0  ;;  %v1296_v62 = vpop.f32.mrb[6].mxu1 }
 0x27d   : > { %v3280_v63 = vpop.f32.mrb[7].mxu1 }
 0x281   : > { %v1113_v2 = vpop.f32.mrb[8].mxu0 }
 0x282   : > { %v1397_v3 = vpop.f32.mrb[8].mxu1  ;;  %v3255_v4 = vpop.f32.mrb[9].mxu0  ;;  %v1114_v33 = vadd.f32 %v3037_v28, %v1113_v2 }
 0x283   : > { %v1398_v5 = vadd.f32 %v3054_v0, %v1397_v3  ;;  %v1116_v6 = vpop.f32.mrb[10].mxu0  ;;  %v3295_v7 = vpop.f32.mrb[9].mxu1 }
 0x284   : > { %v3256_v9 = vpop.f32.mrb[11].mxu0  ;;  %v1400_v10 = vpop.f32.mrb[10].mxu1 }
 0x285   : > { %3345 = vmatpush3.xpose.msk.msra.mxu1 %vm1635_vm6, %v1398_v5  ;;  %v3296_v11 = vpop.f32.mrb[11].mxu1 }
 0x286   : > { %3354 = vmatprep.subr.mxu1 %v3675_v22 }
 0x288   : > { %3347 = vmatmul.mubr.msk.f32.vlgmr.msra.gmra.mrb[20].mxu1 %vm1635_vm6, %v1166_v8 }
 0x289   : > { %v1241_v14 = vpop.f32.mrb[12].mxu0  ;;  %3356 = vmatprep.mubr.msk.f32.mxu1 %vm3676_vm4, %v3675_v22 }
 0x28a   : > { %v1242_v16 = vadd.f32 %v3051_v12, %v1241_v14  ;;  %v3271_v17 = vpop.f32.mrb[13].mxu0 }
 0x28b   : > { %v1244_v18 = vpop.f32.mrb[14].mxu0  ;;  %v1525_v35 = vpop.f32.mrb[12].mxu1 }
 0x28c   : > { %v3272_v20 = vpop.f32.mrb[15].mxu0  ;;  %3330 = vmatpush3.xpose.msk.msra.mxu0 %vm1635_vm6, %v1242_v16  ;;  %v1526_v36 = vadd.f32 %v3068_v34, %v1525_v35  ;;  %v3311_v37 = vpop.f32.mrb[13].mxu1 }
 0x28d   : > { %3334 = vmatprep.subr.mxu0 %v3675_v22  ;;  %v1528_v38 = vpop.f32.mrb[14].mxu1 }
 0x28e   : > { %v3312_v39 = vpop.f32.mrb[15].mxu1  ;;  %3355 = vmatpush3.msra.mxu1 %v1526_v36  ;;  %v3070_v36 = vld [vmem:[%s3869_s20 + $0xb] ss:$0 sm:$0xff] }
 0x28f   : > { %3332 = vmatmul.mubr.msk.f32.vlgmr.msra.gmra.mrb[28].mxu0 %vm1635_vm6, %v1010_v21  ;;  %3364 = vmatprep.subr.mxu1 %v3675_v22 }
 0x290   : > { %3335 = vmatpush3.xpose.msk.msra.mxu0 %vm1635_vm6, %v1294_v19  ;;  %3336 = vmatprep.mubr.msk.f32.mxu0 %vm3676_vm4, %v3675_v22 }
 0x291   : > { %v1345_v27 = vpop.f32.mrb[16].mxu0  ;;  %3339 = vmatprep.subr.mxu0 %v3675_v22 }
 0x292   : > { %v1346_v29 = vadd.f32 %v3053_v24, %v1345_v27  ;;  %v3287_v30 = vpop.f32.mrb[17].mxu0 }
 0x293   : > { %3337 = vmatmul.mubr.msk.f32.vlgmr.msra.gmra.mrb[30].mxu0 %vm1635_vm6, %v1062_v25  ;;  %v1348_v31 = vpop.f32.mrb[18].mxu0  ;;  %v4078_v45 = vpop.f32.mrb[16].mxu1 }
 0x294   : > { %3340 = vmatpush3.xpose.msk.msra.mxu0 %vm1635_vm6, %v1346_v29  ;;  %v3288_v32 = vpop.f32.mrb[19].mxu0  ;;  %3341 = vmatprep.mubr.msk.f32.mxu0 %vm3676_vm4, %v3675_v22  ;;  %v3327_v47 = vpop.f32.mrb[17].mxu1  ;;  %v3069_v31 = vld [vmem:[%s3869_s20 + $0xa] ss:$0 sm:$0xff]  ;;  %v1630_v39 = vadd.f32 %v3070_v36, %v4078_v45  ;;  %s4332_s20 = scalar_lea.vmem %s4268_s6, %s3848_s24 }
 0x295   : > { %3349 = vmatprep.subr.mxu0 %v3675_v22  ;;  %v1632_v48 = vpop.f32.mrb[18].mxu1  ;;  %v3546_v36 = vld [vmem:[%s3900_s17 + $0x8] sm:$0xff]  }
 0x296   : > { %v3328_v49 = vpop.f32.mrb[19].mxu1  ;;  %v2286_v48 = vld [vmem:[%s3864_s15 + $0x8] sm:$0xf] }
 0x297   : > { %3342 = vmatmul.mubr.msk.f32.vlgmr.msra.gmra.mrb[32].mxu0 %vm1635_vm6, %v1114_v33 }
 0x298   : > { %3351 = vmatprep.mubr.msk.f32.mxu0 %vm3676_vm4, %v3675_v22 }
 0x299   : > { %v1473_v41 = vpop.f32.mrb[20].mxu0 }
 0x29a   : > { %v1474_v42 = vadd.f32 %v3067_v40, %v1473_v41  ;;  %v3303_v43 = vpop.f32.mrb[21].mxu0 }
 0x29b   : > { %v1476_v44 = vpop.f32.mrb[22].mxu0 }
 0x29c   : > { %v3304_v46 = vpop.f32.mrb[23].mxu0  ;;  %3350 = vmatpush3.msra.mxu0 %v1474_v42  ;;  %v2284_v44 = vld [vmem:[%s3864_s15] sm:$0xf] }
 0x29d   : > { %3359 = vmatprep.subr.mxu0 %v3675_v22  ;;  %v2293_v45 = vsel %vm2291_vm7, %v2284_v44, 0  ;;  %v2285_v46 = vld [vmem:[%s3864_s15 + $0x4] sm:$0xf] }
 0x29e   : > { %v2339_v47 = vsel %vm2291_vm7, %v2285_v46, 0 }
 0x2a1   : > { %v1577_v50 = vpop.f32.mrb[24].mxu0 }
 0x2a2   : > { %v3319_v51 = vpop.f32.mrb[25].mxu0  ;;  %v1578_v35 = vadd.f32 %v3069_v31, %v1577_v50 }
 0x2a3   : > { %v1580_v52 = vpop.f32.mrb[26].mxu0 }
 0x2a4   : > { %v3320_v53 = vpop.f32.mrb[27].mxu0  ;;  %v2385_v52 = vsel %vm2291_vm7, %v2286_v48, 0 }
 0x2a5   : > { %v2287_v53 = vld [vmem:[%s3864_s15 + $0xc] sm:$0xf] }
 0x35b   : > { %v1936_v54 = vpop.f32.mrb[20].mxu1 }
 0x35c   : > { %v3348_v55 = vpop.f32.mrb[21].mxu1  ;;  %v1943_v3 = vmul.f32 0.35355338, %v1936_v54 }
 0x35e   : > { %v1953_v5 = vsel %vm1635_vm6, %v1943_v3, -inf }
 0x362   : > { %v1708_v56 = vpop.f32.mrb[28].mxu0 }
 0x363   : > { %v1940_v57 = vmul.f32 0.35355338, %v1708_v56  ;;  %v3333_v58 = vpop.f32.mrb[29].mxu0 }
 0x365   : > { %v1944_v59 = vsel %vm1635_vm6, %v1940_v57, -inf }
 0x366   : > { %1945 = vmax.xlane.f32.xlu0 %v1944_v59  ;;  %v1784_v60 = vpop.f32.mrb[30].mxu0 }
 0x367   : > { %v1941_v61 = vmul.f32 0.35355338, %v1784_v60  ;;  %v3338_v62 = vpop.f32.mrb[31].mxu0 }
 0x369   : > { %v1947_v63 = vsel %vm1635_vm6, %v1941_v61, -inf }
 0x36a   : > { %1948 = vmax.xlane.f32.xlu0 %v1947_v63  ;;  %v1860_v0 = vpop.f32.mrb[32].mxu0 }
 0x36b   : > { %v1942_v1 = vmul.f32 0.35355338, %v1860_v0  ;;  %v3343_v2 = vpop.f32.mrb[33].mxu0 }
 0x36d   : > { %v1950_v4 = vsel %vm1635_vm6, %v1942_v1, -inf }
 0x36e   : > { %1951 = vmax.xlane.f32.xlu1 %v1950_v4 }
 0x372   : > { %1954 = vmax.xlane.f32.xlu1 %v1953_v5 }
 0x3f3   : > { %v1946_v6 = vpop.xlane.xlu0 %1945 }
 0x3f4   : > { %v1956_v7 = vsub.f32 %v1940_v57, %v1946_v6  ;;  %v2431_v57 = vsel %vm2291_vm7, %v2287_v53, 0  ;;  %v3102_v53 = vld [vmem:[%s736_s22] ss:$0 sm:$0xff] }
 0x3f6   : > { %v1960_v8 = vmul.f32 1.442695, %v1956_v7 }
 0x3f7   : > { %v1949_v9 = vpop.xlane.xlu0 %1948 }
 0x3f8   : > { %3553 = vpow2.f32 %v1960_v8  ;;  %v1957_v10 = vsub.f32 %v1941_v61, %v1949_v9 }
 0x3fa   : > { %v1962_v11 = vmul.f32 1.442695, %v1957_v10 }
 0x3fb   : > { %v1952_v12 = vpop.xlane.xlu1 %1951 }
 0x3fc   : > { %3555 = vpow2.f32 %v1962_v11  ;;  %v1958_v13 = vsub.f32 %v1942_v1, %v1952_v12 }
 0x3fe   : > { %v1964_v14 = vmul.f32 1.442695, %v1958_v13 }
 0x3ff   : > { %v1955_v15 = vpop.xlane.xlu1 %1954 }
 0x400   : > { %3557 = vpow2.f32 %v1964_v14  ;;  %v1959_v16 = vsub.f32 %v1943_v3, %v1955_v15 }
 0x402   : > { %v3554_v17 = vpop.eup %3553  ;;  %v1966_v18 = vmul.f32 1.442695, %v1959_v16 }
 0x403   : > { %v1968_v19 = vsel %vm1635_vm6, %v3554_v17, 0.0 }
 0x404   : > { %3559 = vpow2.f32 %v1966_v18  ;;  %1969 = vadd.xlane.f32.xlu0 %v1968_v19  ;;  %v3099_v19 = vld [vmem:[%s4332_s20] ss:$0 sm:$0xff] }
 0x406   : > { %v3556_v20 = vpop.eup %3555 }
 0x407   : > { %v1971_v21 = vsel %vm1635_vm6, %v3556_v20, 0.0 }
 0x408   : > { %1972 = vadd.xlane.f32.xlu1 %v1971_v21 }
 0x40a   : > { %v3558_v23 = vpop.eup %3557 }
 0x40b   : > { %v1974_v24 = vsel %vm1635_vm6, %v3558_v23, 0.0 }
 0x40c   : > { %1975 = vadd.xlane.f32.xlu0 %v1974_v24 }
 0x40e   : > { %v3560_v25 = vpop.eup %3559 }
 0x40f   : > { %v1977_v27 = vsel %vm1635_vm6, %v3560_v25, 0.0 }
 0x410   : > { %1978 = vadd.xlane.f32.xlu1 %v1977_v27 }
 0x491   : > { %v1970_v28 = vpop.xlane.xlu0 %1969 }
 0x492   : > { %3561 = vrcp.f32 %v1970_v28 }
 0x495   : > { %v1973_v29 = vpop.xlane.xlu1 %1972 }
 0x496   : > { %3563 = vrcp.f32 %v1973_v29 }
 0x499   : > { %v1976_v30 = vpop.xlane.xlu0 %1975 }
 0x49a   : > { %3565 = vrcp.f32 %v1976_v30 }
 0x49c   : > { %v3562_v32 = vpop.eup %3561 }
 0x49d   : > { %v1984_v33 = vmul.f32 %v3562_v32, %v3554_v17  ;;  %v1979_v34 = vpop.xlane.xlu1 %1978 }
 0x49e   : > { %3567 = vrcp.f32 %v1979_v34  ;;  %v3543_v34 = vld [vmem:[%s3886_s5] sm:$0xff]  }
 0x49f   : > { %3352 = vmatmul.mubr.msk.f32.vlgmr.msra.gmra.mrb[34].mxu0 %vm1635_vm6, %v1984_v33 }
 0x4a0   : > { %v3564_v37 = vpop.eup %3563  ;;  %3360 = vmatpush3.msra.mxu0 %v1578_v35  ;;  %3361 = vmatprep.mubr.msk.f32.mxu0 %vm3676_vm4, %v3675_v22  ;;  %v3544_v35 = vld [vmem:[%s3886_s5 + $0x8] sm:$0xff]  }
 0x4a1   : > { %v1985_v38 = vmul.f32 %v3564_v37, %v3556_v20  ;;  %3369 = vmatprep.subr.bf16.mxu0 %v3675_v22  ;;  %v3547_v37 = vld [vmem:[%s3900_s17 + $0x10] sm:$0xff]  }
 0x4a3   : > { %3357 = vmatmul.mubr.msk.f32.vlgmr.msra.gmra.mrb[22].mxu1 %vm1635_vm6, %v1985_v38  ;;  %v3548_v38 = vld [vmem:[%s3900_s17 + $0x18] sm:$0xff]  }
 0x4a4   : > { %v3566_v40 = vpop.eup %3565  ;;  %3365 = vmatpush3.msra.mxu1 %v1630_v39  ;;  %3366 = vmatprep.mubr.msk.f32.mxu1 %vm3676_vm4, %v3675_v22  ;;  %v3549_v39 = vld [vmem:[%s3900_s17 + $0x20] sm:$0xff]  }
 0x4a5   : > { %v1986_v41 = vmul.f32 %v3566_v40, %v3558_v23  ;;  %3375 = vmatprep.subr.bf16.mxu1 %v3675_v22  ;;  %v3550_v40 = vld [vmem:[%s3900_s17 + $0x28] sm:$0xff]  }
 0x4a7   : > { %3362 = vmatmul.mubr.msk.f32.vlgmr.msra.gmra.mrb[36].mxu0 %vm1635_vm6, %v1986_v41 }
 0x4a8   : > { %v3568_v42 = vpop.eup %3567  ;;  %3371 = vmatprep.mubr.msk.bf16.mxu0 %vm3676_vm4, %v3675_v22  ;;  %3370 = vmatpush3.bf16.msra.mxu0 %v2293_v45  ;;  %v3100_v45 = vld [vmem:[%s4333_s21] ss:$0 sm:$0xff] }
 0x4a9   : > { %v1987_v43 = vmul.f32 %v3568_v42, %v3560_v25  ;;  %3381 = vmatprep.subr.bf16.mxu0 %v3675_v22 }
 0x4ab   : > { %3367 = vmatmul.mubr.msk.f32.vlgmr.msra.gmra.mrb[24].mxu1 %vm1635_vm6, %v1987_v43 }
 0x4ac   : > { %3377 = vmatprep.mubr.msk.bf16.mxu1 %vm3676_vm4, %v3675_v22  ;;  %3376 = vmatpush3.bf16.msra.mxu1 %v2339_v47  ;;  %v3101_v47 = vld [vmem:[%s4334_s26] ss:$0 sm:$0xff] }
 0x4ad   : > { %3387 = vmatprep.subr.bf16.mxu1 %v3675_v22 }
 0x572   : > { %v2057_v49 = vpop.f32.mrb[34].mxu0 }
 0x573   : > { %v2280_v50 = vpack.c.bf16 %v2057_v49, %v2057_v49  ;;  %v3353_v51 = vpop.f32.mrb[35].mxu0 }
 0x574   : > { %v3551_v51 = vld [vmem:[%s3900_s17 + $0x30] sm:$0xff]  }
 0x575   : > { %3372 = vmatmul.mubr.msk.bf16.vlgmr.msra.gmra.mrb[40].mxu0 %vm1635_vm6, %v2280_v50 }
 0x576   : > { %v2130_v54 = vpop.f32.mrb[22].mxu1  ;;  %3382 = vmatpush3.bf16.msra.mxu0 %v2385_v52  ;;  %3383 = vmatprep.mubr.msk.bf16.mxu0 %vm3676_vm4, %v3675_v22  ;;  %v3552_v52 = vld [vmem:[%s3900_s17 + $0x38] sm:$0xff]  }
 0x577   : > { %v2281_v55 = vpack.c.bf16 %v2130_v54, %v2130_v54  ;;  %v3358_v56 = vpop.f32.mrb[23].mxu1  ;;  %3393 = vmatprep.subr.bf16.mxu0 %v3675_v22 }
 0x579   : > { %3378 = vmatmul.mubr.msk.bf16.vlgmr.msra.gmra.mrb[28].mxu1 %vm1635_vm6, %v2281_v55 }
 0x57a   : > { %v2203_v58 = vpop.f32.mrb[36].mxu0  ;;  %3388 = vmatpush3.bf16.msra.mxu1 %v2431_v57  ;;  %3389 = vmatprep.mubr.msk.bf16.mxu1 %vm3676_vm4, %v3675_v22 }
 0x57b   : > { %v2282_v59 = vpack.c.bf16 %v2203_v58, %v2203_v58  ;;  %v3363_v60 = vpop.f32.mrb[37].mxu0  ;;  %3401 = vmatprep.subr.bf16.mxu1 %v3675_v22 }
 0x57d   : > { %3384 = vmatmul.mubr.msk.bf16.vlgmr.msra.gmra.mrb[44].mxu0 %vm1635_vm6, %v2282_v59 }
 0x57e   : > { %v2276_v61 = vpop.f32.mrb[24].mxu1  ;;  %3397 = vmatprep.mubr.msk.bf16.mxu0 %vm3676_vm4, %v3675_v22  ;;  %3394 = vmatpush3.bf16.msra.mxu0 %v3543_v34 }
 0x57f   : > { %v2283_v62 = vpack.c.bf16 %v2276_v61, %v2276_v61  ;;  %v3368_v63 = vpop.f32.mrb[25].mxu1  ;;  %3395 = vmatprep.subr.bf16.mxu0 %v3675_v22 }
 0x581   : > { %3390 = vmatmul.mubr.msk.bf16.vlgmr.msra.gmra.mrb[32].mxu1 %vm1635_vm6, %v2283_v62 }
 0x582   : > { %3417 = vmatprep.mubr.msk.bf16.mxu1 %vm3676_vm4, %v3675_v22  ;;  %3396 = vmatpush3.bf16.msra.mxu0 %v3544_v35 }
 0x648   : > { %v2329_v0 = vpop.f32.mrb[40].mxu0 }
 0x649   : > { %v3373_v1 = vpop.f32.mrb[41].mxu0  ;;  %v2473_v5 = vsel %vm971_vm5, %v2329_v0, 0.0 }
 0x64a   : > { %v2332_v2 = vpop.f32.mrb[42].mxu0 }
 0x64b   : > { %v3374_v3 = vpop.f32.mrb[43].mxu0 }
 0x64c   : > { %v2375_v4 = vpop.f32.mrb[28].mxu1 }
 0x64d   : > { %v2474_v6 = vsel %vm971_vm5, %v2375_v4, 0.0  ;;  %v3379_v7 = vpop.f32.mrb[29].mxu1 }
 0x64e   : > { %v2475_v8 = vadd.f32 %v2474_v6, %v2473_v5  ;;  %v2378_v9 = vpop.f32.mrb[30].mxu1 }
 0x64f   : > { %v3380_v10 = vpop.f32.mrb[31].mxu1 }
 0x650   : > { %v2421_v11 = vpop.f32.mrb[44].mxu0 }
 0x651   : > { %v2476_v12 = vsel %vm971_vm5, %v2421_v11, 0.0  ;;  %v3385_v13 = vpop.f32.mrb[45].mxu0 }
 0x652   : > { %v2477_v14 = vadd.f32 %v2476_v12, %v2475_v8  ;;  %v2424_v15 = vpop.f32.mrb[46].mxu0  ;;  %v3115_v13 = vld [vmem:[%s747_s16] ss:$0 sm:$0xff] }
 0x653   : > { %v3386_v16 = vpop.f32.mrb[47].mxu0  ;;  %v3116_v15 = vld [vmem:[%s750_s9] ss:$0 sm:$0xff] }
 0x654   : > { %v2467_v17 = vpop.f32.mrb[32].mxu1 }
 0x655   : > { %v2478_v18 = vsel %vm971_vm5, %v2467_v17, 0.0  ;;  %v3391_v20 = vpop.f32.mrb[33].mxu1 }
 0x656   : > { %v2479_v21 = vadd.f32 %v2478_v18, %v2477_v14  ;;  %v2470_v23 = vpop.f32.mrb[34].mxu1  ;;  %v3573_v18 = vld [vmem:[%s4338_s1] sm:$0xff] (!%p3117_p1)   ;;  %v3574_v20 = vld [vmem:[%s4338_s1 + $0x8] sm:$0xff] (!%p3117_p1)  }
 0x657   : > { %v3392_v24 = vpop.f32.mrb[35].mxu1  ;;  %v3118_v23 = vld [vmem:[%s4339_s30] ss:$0 sm:$0xff] (!%p3117_p1) }
 0x658   : > { %v2487_v25 = vadd.f32 %v3099_v19, %v2479_v21  ;;  %v3677_v19 = vmov (!%p3117_p1), 0.0  }
 0x659   : > { %3421 = vmatprep.subr.bf16.mxu0 (!%p3117_p1), %v3677_v19 }
 0x65a   : > { %v2488_v27 = vadd.f32 %v2487_v25, %v3951_v26  ;;  %v3545_v26 = vld [vmem:[%s3900_s17] sm:$0xff]  }
 0x65b   : > { %3402 = vmatpush3.bf16.msra.mxu1 %v3545_v26 }
 0x65c   : > { %v2491_v28 = vsel %vm971_vm5, %v2488_v27, 0.0  ;;  %3403 = vmatprep.subr.bf16.mxu1 %v3675_v22 }
 0x65d   : > { %2492 = vadd.xlane.f32.xlu0 %v2491_v28 }
 0x65f   : > { %3404 = vmatpush3.bf16.msra.mxu1 %v3546_v36 }
 0x660   : > { %3405 = vmatprep.subr.bf16.mxu1 %v3675_v22 }
 0x663   : > { %3406 = vmatpush3.bf16.msra.mxu1 %v3547_v37 }
 0x664   : > { %3407 = vmatprep.subr.bf16.mxu1 %v3675_v22 }
 0x667   : > { %3408 = vmatpush3.bf16.msra.mxu1 %v3548_v38 }
 0x668   : > { %3409 = vmatprep.subr.bf16.mxu1 %v3675_v22 }
 0x66b   : > { %3410 = vmatpush3.bf16.msra.mxu1 %v3549_v39 }
 0x66c   : > { %3411 = vmatprep.subr.bf16.mxu1 %v3675_v22 }
 0x66f   : > { %3412 = vmatpush3.bf16.msra.mxu1 %v3550_v40 }
 0x670   : > { %3413 = vmatprep.subr.bf16.mxu1 %v3675_v22 }
 0x673   : > { %3414 = vmatpush3.bf16.msra.mxu1 %v3551_v51 }
 0x674   : > { %3415 = vmatprep.subr.bf16.mxu1 %v3675_v22  ;;  %v3106_v22 = vld [vmem:[%s4335_s3] ss:$0 sm:$0xff] }
 0x677   : > { %3416 = vmatpush3.bf16.msra.mxu1 %v3552_v52 }
 0x6ea   : > { %v2493_v29 = vpop.xlane.xlu0 %2492 }
 0x6eb   : > { %v2495_v30 = vmul.f32 0.03125, %v2493_v29 }
 0x6ed   : > { %v2496_v31 = vsub.f32 %v2488_v27, %v2495_v30 }
 0x6ef   : > { %v2497_v32 = vmul.f32 %v2496_v31, %v2496_v31 }
 0x6f1   : > { %v2498_v33 = vsel %vm971_vm5, %v2497_v32, 0.0 }
 0x6f2   : > { %2499 = vadd.xlane.f32.xlu1 %v2498_v33 }
 0x77f   : > { %v2500_v41 = vpop.xlane.xlu1 %2499 }
 0x780   : > { %v2501_v42 = vmul.f32 0.03125, %v2500_v41 }
 0x782   : > { %v2502_v43 = vadd.f32 1e-05, %v2501_v42 }
 0x784   : > { %3569 = vrsqrt.f32 %v2502_v43 }
 0x78e   : > { %v3570_v44 = vpop.eup %3569 }
 0x78f   : > { %v2504_v46 = vmul.f32 %v3570_v44, %v2496_v31 }
 0x791   : > { %v2511_v48 = vmul.f32 %v3100_v45, %v2504_v46 }
 0x793   : > { %v2518_v49 = vadd.f32 %v3101_v47, %v2511_v48 }
 0x795   : > { %v2519_v50 = vpack.c.bf16 %v2518_v49, %v2518_v49 }
 0x797   : > { %3398 = vmatmul.mubr.msk.bf16.vlgmr.msra.gmra.mrb[48].mxu0 %vm971_vm5, %v2519_v50 }
 0x798   : > { %3422 = vmatpush3.bf16.msra.mxu0 (!%p3117_p1), %v3573_v18  ;;  %3425 = vmatprep.mubr.msk.bf16.mxu0 (!%p3117_p1), %vm3678_vm8, %v3677_v19 }
 0x799   : > { %3423 = vmatprep.subr.bf16.mxu0 (!%p3117_p1), %v3677_v19 }
 0x79c   : > { %3424 = vmatpush3.bf16.msra.mxu0 (!%p3117_p1), %v3574_v20 }
 0x86a   : > { %v2580_v54 = vpop.f32.mrb[48].mxu0 }
 0x86b   : > { %v2581_v55 = vadd.f32 %v3102_v53, %v2580_v54  ;;  %v3399_v56 = vpop.f32.mrb[49].mxu0 }
 0x86c   : > { %v2583_v57 = vpop.f32.mrb[50].mxu0 }
 0x86d   : > { %v2586_v58 = vmax.f32 %v2581_v55, 0.0  ;;  %v3400_v59 = vpop.f32.mrb[51].mxu0 }
 0x86f   : > { %v2587_v60 = vpack.c.bf16 %v2586_v58, %v2586_v58 }
 0x871   : > { %3418 = vmatmul.mubr.bf16.vlgmr.msra.gmra.mrb[36].mxu1 %v2587_v60 }
 0x944   : > { %v2693_v61 = vpop.f32.mrb[36].mxu1 }
 0x945   : > { %v2694_v62 = vadd.f32 %v3106_v22, %v2693_v61  ;;  %v3419_v63 = vpop.f32.mrb[37].mxu1 }
 0x946   : > { %v2696_v0 = vpop.f32.mrb[38].mxu1 }
 0x947   : > { %v3420_v1 = vpop.f32.mrb[39].mxu1  ;;  %v2699_v2 = vadd.f32 %v2694_v62, %v2518_v49 }
 0x949   : > { %v2702_v3 = vsel %vm971_vm5, %v2699_v2, 0.0 }
 0x94a   : > { %2703 = vadd.xlane.f32.xlu0 %v2702_v3 }
 0x9d7   : > { %v2704_v4 = vpop.xlane.xlu0 %2703 }
 0x9d8   : > { %v2705_v5 = vmul.f32 0.03125, %v2704_v4 }
 0x9da   : > { %v2706_v6 = vsub.f32 %v2699_v2, %v2705_v5 }
 0x9dc   : > { %v2707_v7 = vmul.f32 %v2706_v6, %v2706_v6 }
 0x9de   : > { %v2708_v8 = vsel %vm971_vm5, %v2707_v7, 0.0 }
 0x9df   : > { %2709 = vadd.xlane.f32.xlu1 %v2708_v8 }
 0xa6c   : > { %v2710_v9 = vpop.xlane.xlu1 %2709 }
 0xa6d   : > { %v2711_v10 = vmul.f32 0.03125, %v2710_v9 }
 0xa6f   : > { %v2712_v11 = vadd.f32 1e-05, %v2711_v10 }
 0xa71   : > { %3571 = vrsqrt.f32 %v2712_v11 }
 0xa7b   : > { %v3572_v12 = vpop.eup %3571 }
 0xa7c   : > { %v2714_v14 = vmul.f32 %v3572_v12, %v2706_v6  ;;  %2733 = sbr.rel (%p3117_p1) target bundleno = 2907 (0xb5b), region = 96 }
 0xa7e   : > { %v2721_v16 = vmul.f32 %v3115_v13, %v2714_v14 }
 0xa80   : > { %v2728_v17 = vadd.f32 %v3116_v15, %v2721_v16 }
 0xa82   : > { %2729 = vst.msk [vmem:[#allocation2] sm:$0xff] %vm971_vm5, %v2728_v17  ;;  %v2734_v21 = vpack.c.bf16 (!%p3117_p1), %v2728_v17, %v2728_v17 }
 0xa84   : > { %3426 = vmatmul.mubr.msk.bf16.vlgmr.msra.gmra.mrb[0].mxu0 %vm971_vm5, %v2734_v21 }
 0xb57   : > { %v2795_v24 = vpop.f32.mrb[0].mxu0 }
 0xb58   : > { %v2796_v25 = vadd.f32 %v3118_v23, %v2795_v24  ;;  %v3427_v27 = vpop.f32.mrb[1].mxu0 }
 0xb59   : > { %v2798_v28 = vpop.f32.mrb[2].mxu0 }
 0xb5a   : > { %2801 = vst [vmem:[%s701_s2] sm:$0xff] %v2796_v25  ;;  %v3428_v29 = vpop.f32.mrb[3].mxu0 }
 0xb5b PF: > { %s4340_s28 = sld [smem:[#allocation10_spill]]  ;;  %s4341_s26 = sld [smem:[#allocation7_spill]] }
 0xb5c   : > { %s4343_s3 = sld [smem:[#allocation29_spill]]  ;;  %s2816_s22 = sshll.u32 %s701_s2, 4  ;;  %s2817_s22 = int_to_ptr.vmem [resolvable:$true] %s2816_s22 }
 0xb5d   : > { %s3575_s15 = scalar_lea.vmem %s2817_s22, 128  ;;  %s3679_s25 = smov [#allocation3]  }
 0xb5e   : > { %p3576_p2 = scmp.ne.s32.totalorder %s2817_s22, %s3575_s15  ;;  %s3579_s20 = sshll.u32 %s3679_s25, 4  ;;  %s3580_s20 = int_to_ptr.vmem [resolvable:$false] %s3579_s20 }
 0xb5f   : > { %s3581_s5 = scalar_lea.vmem %s3580_s20, 256  ;;  %p3582_p6 = scmp.lt.s32.totalorder %s2817_s22, %s3580_s20 }
 0xb60   : > { %p3577_p4 = pnand %p3576_p2, %p3819_p3  ;;  %p3583_p7 = scmp.lt.s32.totalorder %s3581_s5, %s3575_s15 }
 0xb61   : > { %s3123_s23 = sshll.u32 %s4340_s28, 7  ;;  %s4344_s19 = sand.u32 1, %s4341_s26  }
 0xb62   : > { %s4211_s17 = scalar_lea.hbm %s4343_s3, %s3123_s23  ;;  %s2803_s27 = scalar_lea.sflag [#allocation4], %s4344_s19 }
 0xb63   : > { %p3578_p5 = pneg %p3577_p4  ;;  %p3584_p8 = por %p3583_p7, %p3582_p6 }
 0xb65   : > { %p3585_p10 = pnand %p3584_p8, %p3578_p5 }
 0xb67   : > { %3588 = shalt.err (!%p3585_p10)
}
 0xb68   : > { %s3589_s29 = scalar_lea.hbm %s4211_s17, 128  ;;  %s3593_s21 = scalar_lea.hbm %s4343_s3, 256 }
 0xb69   : > { %p3590_p11 = scmp.ne.s32.totalorder %s4211_s17, %s3589_s29  ;;  %p3594_p0 = scmp.lt.u32.totalorder %s4211_s17, %s4343_s3 }
 0xb6a   : > { %p3595_p1 = scmp.lt.u32.totalorder %s3593_s21, %s3589_s29  ;;  %p3597_p4 = scmp.lt.u32.totalorder %s3589_s29, %s4211_s17 }
 0xb6b   : > { %p3591_p12 = pnand %p3590_p11, %p3819_p3 }
 0xb6c   : > { %p3596_p2 = por %p3595_p1, %p3594_p0 }
 0xb6d   : > { %p3592_p13 = pneg %p3591_p12 }
 0xb6e   : > { %p3598_p5 = por %p3597_p4, %p3596_p2 }
 0xb70   : > { %p3599_p6 = pnand %p3598_p5, %p3592_p13 }
 0xb72   : > { %3602 = shalt.err (!%p3599_p6)
}
 0xb73   : > { %3431 = dma.vmem_to_hbm [thread:$0]  (%p3819_p3), %s2817_s22, 128, %s4211_s17, %s2803_s27  }
 0xb74 PF: > { %s4345_s30 = sld [smem:[#allocation13_spill]]  ;;  %s4346_s28 = sld [smem:[#allocation6_spill]] }
 0xb7a   : > { %p3437_p7 = scmp.ge.s32.totalorder %s4345_s30, 2  ;;  %s2828_s23 = sand.u32 1, %s4346_s28  }
 0xb7b   : > { %s2829_s4 = scalar_lea.sflag [#allocation4], %s2828_s23 }
 0xb7c   : > { %p3434_p8 = pnand %p3437_p7, %p3829_p9 }
 0xb7e   : > { %3636 = dma.done.wait (!%p3434_p8), %s2829_s4, 128  }
 0xb7f   : > { %3638 = vsyncadd (!%p3434_p8), %s2829_s4, 4294967168  ;;  %s30_s30 = sadd.s32 1, %s4345_s30   ;;  %s4348_s24 = sld [smem:[#allocation7_spill]] }
 0xb80   : > { %p27_p10 = scmp.ge.s32.totalorder %s30_s30, 6   ;;  %s4349_s25 = sld [smem:[#allocation8_spill]] }
 0xb81   : > { %s4350_s26 = sld [smem:[#allocation18_spill]]  ;;  %s4351_s27 = sld [smem:[#allocation11_spill]] }
 0xb82   : > { %s4352_s28 = sld [smem:[#allocation12_spill]]  ;;  %s4353_s29 = sld [smem:[#allocation14_spill]] }
 0xb83   : > { %s4354_s0 = sld [smem:[#allocation16_spill]]  ;;  %29 = sbr.rel (!%p27_p10) target bundleno = 17 (0x11), region = 167 }
 0xb8a   :  { %2834 = vsyncpa [#allocation4], 1 }
 0xb8b   :  { %2836 = vsyncpa [#allocation4 + $0x1], 1 }

</bundles_post_ra>
